<compile_context>
chip_gen: v5e
topology: v5e:2x2
jax: 0.10.0
libtpu: 0.0.40
codegen_flags: <defaults>
</compile_context>

<pallas_src>
import jax
import jax.numpy as jnp
from jax.experimental import pallas as pl
from jax.experimental.pallas import tpu as pltpu

NUM_STATES = 8
NUM_ACTIONS = 4
H1 = 512
H2 = 256
LANE_PAD = 128   # lane-dense padded width for the action head
TB = 128         # batch-tile rows per grid step (MXU-height)


def mlp_kernel(x_ref, w1_ref, b1_ref, w2_ref, b2_ref, w3_ref, b3_ref, o_ref):
    # Layer 1: Linear(8, 512) + ReLU.  Tiny K -> keep f32 MXU operands.
    h1 = jnp.dot(x_ref[...], w1_ref[...], preferred_element_type=jnp.float32)
    h1 = jnp.maximum(h1 + b1_ref[...], 0.0)

    # Layer 2: Linear(512, 256) + ReLU.  bf16 MXU operands, f32 accumulate,
    # bias-add / ReLU stay in f32 (no bf16 VPU work -> v5e-friendly).
    h2 = jnp.dot(h1.astype(jnp.bfloat16), w2_ref[...],
                 preferred_element_type=jnp.float32)
    h2 = jnp.maximum(h2 + b2_ref[...], 0.0)

    # Layer 3: Linear(256, num_actions) padded to 128 lanes (unmasked stores).
    out = jnp.dot(h2.astype(jnp.bfloat16), w3_ref[...],
                  preferred_element_type=jnp.float32) + b3_ref[...]
    o_ref[...] = out.astype(o_ref.dtype)


def prepare_kernel_params(params):
    """Pad the action head to 128 lanes and cast the big-K weights to bf16."""
    w1 = params["w1"].astype(jnp.float32)                    # (8, 512)   f32
    b1 = params["b1"].astype(jnp.float32)                    # (1, 512)   f32
    w2 = params["w2"].astype(jnp.bfloat16)                   # (512, 256) bf16
    b2 = params["b2"].astype(jnp.float32)                    # (1, 256)   f32
    w3 = jnp.pad(params["w3"], ((0, 0), (0, LANE_PAD - NUM_ACTIONS)))
    w3 = w3.astype(jnp.bfloat16)                             # (256, 128) bf16
    b3 = jnp.pad(params["b3"], ((0, 0), (0, LANE_PAD - NUM_ACTIONS)))
    b3 = b3.astype(jnp.float32)                              # (1, 128)   f32
    return w1, b1, w2, b2, w3, b3


def network_forward(x, params):
    """x: (B, num_states) float32 -> (B, num_actions) float32."""
    w1, b1, w2, b2, w3, b3 = prepare_kernel_params(params)

    B = x.shape[0]
    n_tiles = pl.cdiv(B, TB)
    Bp = n_tiles * TB
    if Bp != B:
        # Zero-pad batch rows; padded rows are sliced off below (they are NOT
        # zero after the net because of biases, so never reduce over them).
        x = jnp.pad(x, ((0, Bp - B), (0, 0)))

    # x / out stream per grid step; weights & biases pinned with constant maps.
    const = lambda i: (0, 0)
    in_specs = [
        pl.BlockSpec((TB, NUM_STATES), lambda i: (i, 0)),   # x tile
        pl.BlockSpec((NUM_STATES, H1), const),              # w1
        pl.BlockSpec((1, H1), const),                       # b1
        pl.BlockSpec((H1, H2), const),                      # w2
        pl.BlockSpec((1, H2), const),                       # b2
        pl.BlockSpec((H2, LANE_PAD), const),                # w3 (padded)
        pl.BlockSpec((1, LANE_PAD), const),                 # b3 (padded)
    ]
    out_spec = pl.BlockSpec((TB, LANE_PAD), lambda i: (i, 0))

    flops = 2 * Bp * (NUM_STATES * H1 + H1 * H2 + H2 * LANE_PAD)
    bytes_accessed = (
        x.size * 4 + Bp * LANE_PAD * 4                       # streamed activations
        + w1.size * 4 + b1.size * 4 + w2.size * 2 + b2.size * 4
        + w3.size * 2 + b3.size * 4
    )

    out_padded = pl.pallas_call(
        mlp_kernel,
        out_shape=jax.ShapeDtypeStruct((Bp, LANE_PAD), jnp.float32),
        grid=(n_tiles,),
        in_specs=in_specs,
        out_specs=out_spec,
        compiler_params=pltpu.CompilerParams(
            dimension_semantics=("parallel",)),
        cost_estimate=pl.CostEstimate(
            flops=flops, transcendentals=0, bytes_accessed=bytes_accessed),
    )(x, w1, b1, w2, b2, w3, b3)

    return out_padded[:B, :NUM_ACTIONS]


def init_params(key, num_states, num_actions):
    """Deterministic synthetic init (PyTorch-Linear-like uniform fan-in scaling)."""
    ks = jax.random.split(key, 6)

    def lin(kw, kb, fan_in, fan_out):
        bound = 1.0 / jnp.sqrt(fan_in)
        # stored as (in, out) so the kernel does x @ W + b  (== PyTorch x @ W.T + b)
        w = jax.random.uniform(kw, (fan_in, fan_out), jnp.float32, -bound, bound)
        b = jax.random.uniform(kb, (1, fan_out), jnp.float32, -bound, bound)
        return w, b

    w1, b1 = lin(ks[0], ks[1], num_states, H1)
    w2, b2 = lin(ks[2], ks[3], H1, H2)
    w3, b3 = lin(ks[4], ks[5], H2, num_actions)
    return {"w1": w1, "b1": b1, "w2": w2, "b2": b2, "w3": w3, "b3": b3}


def reference_forward(x, params):
    """Pure-JAX reference mimicking the kernel's precision (bf16 MXU operands on
    layers 2/3, f32 accumulation and elementwise)."""
    h1 = jnp.maximum(x @ params["w1"] + params["b1"], 0.0)
    h2 = jnp.dot(h1.astype(jnp.bfloat16), params["w2"].astype(jnp.bfloat16),
                 preferred_element_type=jnp.float32) + params["b2"]
    h2 = jnp.maximum(h2, 0.0)
    out = jnp.dot(h2.astype(jnp.bfloat16), params["w3"].astype(jnp.bfloat16),
                  preferred_element_type=jnp.float32) + params["b3"]
    return out


def reference_forward_f32(x, params):
    """Full-f32 reference (exact PyTorch semantics) for a looser sanity check."""
    h1 = jnp.maximum(x @ params["w1"] + params["b1"], 0.0)
    h2 = jnp.maximum(h1 @ params["w2"] + params["b2"], 0.0)
    return h2 @ params["w3"] + params["b3"]


if __name__ == "__main__":
    num_states, num_actions = NUM_STATES, NUM_ACTIONS   # LunarLander-v2 dims
    batch = 2

    key = jax.random.PRNGKey(0)
    k_params, k_x = jax.random.split(key)
    params = init_params(k_params, num_states, num_actions)
    x = jax.random.normal(k_x, (batch, num_states), jnp.float32)

    out = network_forward(x, params)
    out = jax.block_until_ready(out)
    assert out.shape == (batch, num_actions)

    ref_bf16 = reference_forward(x, params)
    ref_f32 = reference_forward_f32(x, params)
    assert jnp.allclose(out, ref_bf16, atol=1e-2, rtol=1e-2)
    assert jnp.allclose(out, ref_f32, atol=1e-1, rtol=1e-1)
    print("KERNEL_OK")
</pallas_src>

<mosaic_0001>
module attributes {stable_mosaic.version = 11 : i64} {
  func.func @mlp_kernel(%arg0: i32, %arg1: memref<128x8xf32, #tpu.memory_space<vmem>>, %arg2: memref<8x512xf32, #tpu.memory_space<vmem>>, %arg3: memref<1x512xf32, #tpu.memory_space<vmem>>, %arg4: memref<512x256xbf16, #tpu.memory_space<vmem>>, %arg5: memref<1x256xf32, #tpu.memory_space<vmem>>, %arg6: memref<256x128xbf16, #tpu.memory_space<vmem>>, %arg7: memref<1x128xf32, #tpu.memory_space<vmem>>, %arg8: memref<128x128xf32, #tpu.memory_space<vmem>>) attributes {dimension_semantics = [#tpu.dimension_semantics<parallel>], iteration_bounds = array<i64: 1>, scalar_prefetch = 0 : i64, scratch_operands = 0 : i64, tpu.core_type = #tpu.core_type<tc>, window_params = [{transform_indices = @transform_0, window_bounds = array<i64: 128, 8>}, {pipeline_mode = #tpu.pipeline_mode<synchronous>, transform_indices = @transform_1, window_bounds = array<i64: 8, 512>}, {pipeline_mode = #tpu.pipeline_mode<synchronous>, transform_indices = @transform_2, window_bounds = array<i64: 1, 512>}, {pipeline_mode = #tpu.pipeline_mode<synchronous>, transform_indices = @transform_3, window_bounds = array<i64: 512, 256>}, {pipeline_mode = #tpu.pipeline_mode<synchronous>, transform_indices = @transform_4, window_bounds = array<i64: 1, 256>}, {pipeline_mode = #tpu.pipeline_mode<synchronous>, transform_indices = @transform_5, window_bounds = array<i64: 256, 128>}, {pipeline_mode = #tpu.pipeline_mode<synchronous>, transform_indices = @transform_6, window_bounds = array<i64: 1, 128>}, {transform_indices = @transform_7, window_bounds = array<i64: 128, 128>}]} {
    %c0 = arith.constant 0 : index
    %c0_0 = arith.constant 0 : index
    %0 = vector.load %arg1[%c0, %c0_0] : memref<128x8xf32, #tpu.memory_space<vmem>>, vector<128x8xf32>
    %c0_1 = arith.constant 0 : index
    %c0_2 = arith.constant 0 : index
    %1 = vector.load %arg2[%c0_1, %c0_2] : memref<8x512xf32, #tpu.memory_space<vmem>>, vector<8x512xf32>
    %cst = arith.constant dense<0.000000e+00> : vector<128x512xf32>
    %2 = tpu.matmul %0, %1, %cst {dimension_numbers = #tpu.dot_dimension_numbers<[1], [0], [0], [1], [0, 0, 1, 1], [], []>} : vector<128x8xf32>, vector<8x512xf32>, vector<128x512xf32> -> vector<128x512xf32>
    %c0_3 = arith.constant 0 : index
    %c0_4 = arith.constant 0 : index
    %3 = vector.load %arg3[%c0_3, %c0_4] : memref<1x512xf32, #tpu.memory_space<vmem>>, vector<1x512xf32>
    %4 = vector.broadcast %3 : vector<1x512xf32> to vector<128x512xf32>
    %5 = arith.addf %2, %4 : vector<128x512xf32>
    %cst_5 = arith.constant 0.000000e+00 : f32
    %6 = vector.broadcast %cst_5 : f32 to vector<128x512xf32>
    %7 = arith.maximumf %5, %6 : vector<128x512xf32>
    %8 = arith.truncf %7 : vector<128x512xf32> to vector<128x512xbf16>
    %c0_6 = arith.constant 0 : index
    %c0_7 = arith.constant 0 : index
    %9 = vector.load %arg4[%c0_6, %c0_7] : memref<512x256xbf16, #tpu.memory_space<vmem>>, vector<512x256xbf16>
    %cst_8 = arith.constant dense<0.000000e+00> : vector<128x256xf32>
    %10 = tpu.matmul %8, %9, %cst_8 {dimension_numbers = #tpu.dot_dimension_numbers<[1], [0], [0], [1], [0, 0, 1, 1], [], []>} : vector<128x512xbf16>, vector<512x256xbf16>, vector<128x256xf32> -> vector<128x256xf32>
    %c0_9 = arith.constant 0 : index
    %c0_10 = arith.constant 0 : index
    %11 = vector.load %arg5[%c0_9, %c0_10] : memref<1x256xf32, #tpu.memory_space<vmem>>, vector<1x256xf32>
    %12 = vector.broadcast %11 : vector<1x256xf32> to vector<128x256xf32>
    %13 = arith.addf %10, %12 : vector<128x256xf32>
    %cst_11 = arith.constant 0.000000e+00 : f32
    %14 = vector.broadcast %cst_11 : f32 to vector<128x256xf32>
    %15 = arith.maximumf %13, %14 : vector<128x256xf32>
    %16 = arith.truncf %15 : vector<128x256xf32> to vector<128x256xbf16>
    %c0_12 = arith.constant 0 : index
    %c0_13 = arith.constant 0 : index
    %17 = vector.load %arg6[%c0_12, %c0_13] : memref<256x128xbf16, #tpu.memory_space<vmem>>, vector<256x128xbf16>
    %cst_14 = arith.constant dense<0.000000e+00> : vector<128x128xf32>
    %18 = tpu.matmul %16, %17, %cst_14 {dimension_numbers = #tpu.dot_dimension_numbers<[1], [0], [0], [1], [0, 0, 1, 1], [], []>} : vector<128x256xbf16>, vector<256x128xbf16>, vector<128x128xf32> -> vector<128x128xf32>
    %c0_15 = arith.constant 0 : index
    %c0_16 = arith.constant 0 : index
    %19 = vector.load %arg7[%c0_15, %c0_16] : memref<1x128xf32, #tpu.memory_space<vmem>>, vector<1x128xf32>
    %20 = vector.broadcast %19 : vector<1x128xf32> to vector<128x128xf32>
    %21 = arith.addf %18, %20 : vector<128x128xf32>
    %c0_17 = arith.constant 0 : index
    %c0_18 = arith.constant 0 : index
    %22 = vector.load %arg8[%c0_17, %c0_18] : memref<128x128xf32, #tpu.memory_space<vmem>>, vector<128x128xf32>
    tpu.vector_store %arg8[%c0_17, %c0_18], %21 {strides = array<i32>} : memref<128x128xf32, #tpu.memory_space<vmem>>, vector<128x128xf32>,
    return
  }
  func.func @transform_0(%arg0: i32) -> (i32, i32) {
    %c0_i32 = arith.constant 0 : i32
    %c0_i32_0 = arith.constant 0 : i32
    return %arg0, %c0_i32 : i32, i32
  }
  func.func @transform_1(%arg0: i32) -> (i32, i32) {
    %c0_i32 = arith.constant 0 : i32
    %c0_i32_0 = arith.constant 0 : i32
    %c0_i32_1 = arith.constant 0 : i32
    return %c0_i32, %c0_i32_0 : i32, i32
  }
  func.func @transform_2(%arg0: i32) -> (i32, i32) {
    %c0_i32 = arith.constant 0 : i32
    %c0_i32_0 = arith.constant 0 : i32
    %c0_i32_1 = arith.constant 0 : i32
    return %c0_i32, %c0_i32_0 : i32, i32
  }
  func.func @transform_3(%arg0: i32) -> (i32, i32) {
    %c0_i32 = arith.constant 0 : i32
    %c0_i32_0 = arith.constant 0 : i32
    %c0_i32_1 = arith.constant 0 : i32
    return %c0_i32, %c0_i32_0 : i32, i32
  }
  func.func @transform_4(%arg0: i32) -> (i32, i32) {
    %c0_i32 = arith.constant 0 : i32
    %c0_i32_0 = arith.constant 0 : i32
    %c0_i32_1 = arith.constant 0 : i32
    return %c0_i32, %c0_i32_0 : i32, i32
  }
  func.func @transform_5(%arg0: i32) -> (i32, i32) {
    %c0_i32 = arith.constant 0 : i32
    %c0_i32_0 = arith.constant 0 : i32
    %c0_i32_1 = arith.constant 0 : i32
    return %c0_i32, %c0_i32_0 : i32, i32
  }
  func.func @transform_6(%arg0: i32) -> (i32, i32) {
    %c0_i32 = arith.constant 0 : i32
    %c0_i32_0 = arith.constant 0 : i32
    %c0_i32_1 = arith.constant 0 : i32
    return %c0_i32, %c0_i32_0 : i32, i32
  }
  func.func @transform_7(%arg0: i32) -> (i32, i32) {
    %c0_i32 = arith.constant 0 : i32
    %c0_i32_0 = arith.constant 0 : i32
    return %arg0, %c0_i32 : i32, i32
  }
}

</mosaic_0001>

<bundles_post_ra>
// kernel: tpu_custom_call.1
= control target key start
LH: loop header
LB: loop body
LE: loop exit
PB: predicated region body
PF: predicated region fallthrough
CT: control target
= control target key end

     0   :  { %12 = vsyncpa [#allocation3], 0  ;;  %s2871_s0 = inlined_call_operand.vmem [shape: f32[128,8], index: 0, kind: input, shape index: {}]   ;;  %s2872_s1 = inlined_call_operand.hbm [shape: f32[8,512], index: 1, kind: input, shape index: {}]   ;;  %s2873_s2 = inlined_call_operand.vmem [shape: f32[1,512], index: 2, kind: input, shape index: {}]   ;;  %s2874_s3 = inlined_call_operand.hbm [shape: bf16[512,256], index: 3, kind: input, shape index: {}]   ;;  %s2875_s4 = inlined_call_operand.vmem [shape: f32[1,256], index: 4, kind: input, shape index: {}]   ;;  %s2876_s5 = inlined_call_operand.vmem [shape: bf16[256,128], index: 5, kind: input, shape index: {}]   ;;  %s2877_s6 = inlined_call_operand.vmem [shape: f32[1,128], index: 6, kind: input, shape index: {}]   ;;  %s2878_s7 = inlined_call_operand.hbm [shape: f32[128,128], index: 7, kind: output, shape index: {}]  }
   0x1   :  { %13 = vsyncpa [#allocation6], 0 }
   0x2   :  { %14 = vsyncpa [#allocation4], 0  ;;  %s22_s26 = sshll.u32 %s2872_s1, 4  ;;  %s2138_s27 = smov [#allocation2]   ;;  %s23_s26 = int_to_ptr.hbm [resolvable:$true] %s22_s26 }
   0x3   :  { %s24_s28 = sshll.u32 %s2138_s27, 4  ;;  %s34_s8 = sshll.u32 %s2874_s3, 4  ;;  %s25_s28 = int_to_ptr.vmem [resolvable:$true] %s24_s28  ;;  %s35_s8 = int_to_ptr.hbm [resolvable:$true] %s34_s8 }
   0x4   :  { %27 = dma.hbm_to_vmem [thread:$0]  %s23_s26, 512, %s25_s28, [#allocation3]  }
   0x5   :  { %s2139_s9 = smov [#allocation5]   ;;  %s2140_s11 = smov 128  }
   0x6   :  { %s36_s10 = sshll.u32 %s2139_s9, 4  ;;  %s2141_s12 = smov 8   ;;  %s37_s10 = int_to_ptr.vmem [resolvable:$true] %s36_s10 }
   0x7   :  { %42 = dma.hbm_to_vmem [thread:$0]  %s35_s8, 8192, %s37_s10, [#allocation6], %s2140_s11, %s2140_s11, %s2141_s12  }
   0x8   :  { %2132 = dma.done.wait [#allocation3], 512  }
   0x9   :  { %2133 = vsyncadd [#allocation3], 4294966784 }
   0xa   :  { %2134 = dma.done.wait [#allocation6], 8192  }
   0xb   :  { %2135 = vsyncadd [#allocation6], 4294959104  ;;  %v73_v0 = vld [vmem:[#allocation2] sm:$0xff]  ;;  %v74_v1 = vld [vmem:[#allocation2 + $0x8] sm:$0xff]  ;;  %vm87_vm0 = vcmask 64512   ;;  %s1574_s9 = sshll.u32 %s2878_s7, 4  ;;  %s1575_s9 = int_to_ptr.hbm [resolvable:$true] %s1574_s9 }
   0xc   :  { %v2195_v2 = vld [vmem:[%s2871_s0] sm:$0xff]  ;;  %151 = vmatpush.msra.mxu0 %v73_v0  ;;  %2052 = vmatpush.msra.mxu2 %v73_v0  ;;  %v75_v4 = vld [vmem:[#allocation2 + $0x10] sm:$0xff]  ;;  %v76_v5 = vld [vmem:[#allocation2 + $0x18] sm:$0xff] }
   0xd   :  { %v2200_v3 = vld [vmem:[%s2871_s0 + $0x40] sm:$0xff]  ;;  %216 = vmatpush.msra.mxu1 %v74_v1  ;;  %2053 = vmatpush.msra.mxu3 %v74_v1  ;;  %v58_v6 = vld [vmem:[%s2871_s0 + $0x8] sm:$0xff]  ;;  %v2227_v8 = vld [vmem:[%s2871_s0 + $0x10] sm:$0xff] }
   0xe   :  { %1588 = vmatmul.msk.f32.vlgmr.msra.gmra.mxu0 %vm87_vm0, %v2195_v2  ;;  %1596 = vmatmul.msk.f32.vlgmr.msra.gmra.mxu2 %vm87_vm0, %v2200_v3  ;;  %v2216_v7 = vld [vmem:[%s2871_s0 + $0x48] sm:$0xff]  ;;  %v2232_v9 = vld [vmem:[%s2871_s0 + $0x50] sm:$0xff]  ;;  %v2245_v10 = vld [vmem:[%s2871_s0 + $0x18] sm:$0xff] }
   0xf   :  { %1604 = vmatmul.msk.f32.vlgmr.msra.gmra.mxu1 %vm87_vm0, %v2195_v2  ;;  %1612 = vmatmul.msk.f32.vlgmr.msra.gmra.mxu3 %vm87_vm0, %v2200_v3  ;;  %v2250_v11 = vld [vmem:[%s2871_s0 + $0x58] sm:$0xff]  ;;  %v2263_v12 = vld [vmem:[%s2871_s0 + $0x20] sm:$0xff]  ;;  %v2281_v14 = vld [vmem:[%s2871_s0 + $0x28] sm:$0xff] }
  0x10   :  { %281 = vmatpush.msrb.mxu2 %v75_v4  ;;  %346 = vmatpush.msrb.mxu3 %v76_v5  ;;  %v2268_v13 = vld [vmem:[%s2871_s0 + $0x60] sm:$0xff]  ;;  %v2286_v15 = vld [vmem:[%s2871_s0 + $0x68] sm:$0xff]  ;;  %v2299_v16 = vld [vmem:[%s2871_s0 + $0x30] sm:$0xff] }
  0x11   :  { %v2304_v17 = vld [vmem:[%s2871_s0 + $0x70] sm:$0xff]  ;;  %v2019_v19 = vld [vmem:[#allocation5 + $0x174] sm:$0xf0]  ;;  %v1830_v26 = vld [vmem:[#allocation5 + $0x160] sm:$0xf] }
  0x12   :  { %v1838_v18 = vld [vmem:[#allocation5 + $0x170] sm:$0xf]  ;;  %v2035_v22 = vld [vmem:[#allocation5 + $0x1f4] sm:$0xf0]  ;;  %v2017_v27 = vld [vmem:[#allocation5 + $0x164] sm:$0xf0] }
  0x13   :  { %v1902_v20 = vld [vmem:[#allocation5 + $0x1f0] sm:$0xf]  ;;  %v1839_v21 = vor.u32 %v2019_v19, %v1838_v18  ;;  %v2317_v24 = vld [vmem:[%s2871_s0 + $0x38] sm:$0xff]  ;;  %v1894_v28 = vld [vmem:[#allocation5 + $0x1e0] sm:$0xf]  ;;  %v1831_v29 = vor.u32 %v2017_v27, %v1830_v26 }
  0x14   :  { %v1903_v23 = vor.u32 %v2035_v22, %v1902_v20  ;;  %v2322_v25 = vld [vmem:[%s2871_s0 + $0x78] sm:$0xff]  ;;  %v2033_v30 = vld [vmem:[#allocation5 + $0x1e4] sm:$0xf0]  ;;  %v1710_v32 = vld [vmem:[#allocation5 + $0x70] sm:$0xf] }
  0x15   :  { %980 = vmatpush.bf16.msra.mxu2 %v1839_v21  ;;  %v1895_v31 = vor.u32 %v2033_v30, %v1894_v28  ;;  %v1987_v33 = vld [vmem:[#allocation5 + $0x74] sm:$0xf0]  ;;  %v1774_v34 = vld [vmem:[#allocation5 + $0xf0] sm:$0xf]  ;;  %v1702_v38 = vld [vmem:[#allocation5 + $0x60] sm:$0xf] }
  0x16   :  { %1589 = vmatmul.msk.f32.gmra.mxu0 %vm87_vm0, %v58_v6  ;;  %1597 = vmatmul.msk.f32.gmra.mxu2 %vm87_vm0, %v2216_v7  ;;  %v1711_v35 = vor.u32 %v1987_v33, %v1710_v32  ;;  %v2003_v36 = vld [vmem:[#allocation5 + $0xf4] sm:$0xf0]  ;;  %v1985_v39 = vld [vmem:[#allocation5 + $0x64] sm:$0xf0]  ;;  %v1766_v40 = vld [vmem:[#allocation5 + $0xe0] sm:$0xf] }
  0x17   :  { %1605 = vmatmul.msk.f32.gmra.mxu1 %vm87_vm0, %v58_v6  ;;  %1613 = vmatmul.msk.f32.gmra.mxu3 %vm87_vm0, %v2216_v7  ;;  %v1775_v37 = vor.u32 %v2003_v36, %v1774_v34  ;;  %v1703_v41 = vor.u32 %v1985_v39, %v1702_v38  ;;  %v2001_v42 = vld [vmem:[#allocation5 + $0xe4] sm:$0xf0]  ;;  %v1822_v44 = vld [vmem:[#allocation5 + $0x150] sm:$0xf]  ;;  %v2015_v45 = vld [vmem:[#allocation5 + $0x154] sm:$0xf0] }
  0x18   :  { %1029 = vmatpush.bf16.msra.mxu3 %v1903_v23  ;;  %882 = vmatpush.bf16.msrb.mxu0 %v1711_v35  ;;  %v1767_v43 = vor.u32 %v2001_v42, %v1766_v40  ;;  %v1886_v46 = vld [vmem:[#allocation5 + $0x1d0] sm:$0xf]  ;;  %v1823_v47 = vor.u32 %v2015_v45, %v1822_v44  ;;  %v2031_v48 = vld [vmem:[#allocation5 + $0x1d4] sm:$0xf0]  ;;  %v1686_v56 = vld [vmem:[#allocation5 + $0x40] sm:$0xf] }
  0x19   :  { %981 = vmatpush.bf16.msra.mxu2 %v1831_v29  ;;  %931 = vmatpush.bf16.msrb.mxu1 %v1775_v37  ;;  %v1694_v49 = vld [vmem:[#allocation5 + $0x50] sm:$0xf]  ;;  %v1983_v50 = vld [vmem:[#allocation5 + $0x54] sm:$0xf0]  ;;  %v1887_v51 = vor.u32 %v2031_v48, %v1886_v46  ;;  %v1981_v57 = vld [vmem:[#allocation5 + $0x44] sm:$0xf0] }
  0x1a   :  { %v1695_v52 = vor.u32 %v1983_v50, %v1694_v49  ;;  %v1758_v53 = vld [vmem:[#allocation5 + $0xd0] sm:$0xf]  ;;  %v1999_v54 = vld [vmem:[#allocation5 + $0xd4] sm:$0xf0]  ;;  %v1750_v58 = vld [vmem:[#allocation5 + $0xc0] sm:$0xf]  ;;  %v1687_v59 = vor.u32 %v1981_v57, %v1686_v56 }
  0x1b   :  { %v1759_v55 = vor.u32 %v1999_v54, %v1758_v53  ;;  %v1997_v60 = vld [vmem:[#allocation5 + $0xc4] sm:$0xf0]  ;;  %v1678_v62 = vld [vmem:[#allocation5 + $0x30] sm:$0xf]  ;;  %v1979_v63 = vld [vmem:[#allocation5 + $0x34] sm:$0xf0] }
  0x1c   :  { %1030 = vmatpush.bf16.msra.mxu3 %v1895_v31  ;;  %883 = vmatpush.bf16.msrb.mxu0 %v1703_v41  ;;  %v1751_v61 = vor.u32 %v1997_v60, %v1750_v58  ;;  %v1742_v0 = vld [vmem:[#allocation5 + $0xb0] sm:$0xf]  ;;  %v1679_v1 = vor.u32 %v1979_v63, %v1678_v62  ;;  %v1670_v5 = vld [vmem:[#allocation5 + $0x20] sm:$0xf]  ;;  %v1993_v19 = vld [vmem:[#allocation5 + $0xa4] sm:$0xf0] }
  0x1d   :  { %932 = vmatpush.bf16.msrb.mxu1 %v1767_v43  ;;  %982 = vmatpush.bf16.msra.mxu2 %v1823_v47  ;;  %v1814_v20 = vld [vmem:[#allocation5 + $0x140] sm:$0xf]  ;;  %v2013_v21 = vld [vmem:[#allocation5 + $0x144] sm:$0xf0]  ;;  %v1662_v23 = vld [vmem:[#allocation5 + $0x10] sm:$0xf] }
  0x1e   :  { %1590 = vmatmul.msk.f32.gmra.mxu0 %vm87_vm0, %v2227_v8  ;;  %1598 = vmatmul.msk.f32.gmra.mxu2 %vm87_vm0, %v2232_v9  ;;  %v1815_v22 = vor.u32 %v2013_v21, %v1814_v20  ;;  %v1975_v26 = vld [vmem:[#allocation5 + $0x14] sm:$0xf0]  ;;  %v1726_v27 = vld [vmem:[#allocation5 + $0x90] sm:$0xf]  ;;  %v1878_v31 = vld [vmem:[#allocation5 + $0x1c0] sm:$0xf] }
  0x1f   :  { %1606 = vmatmul.msk.f32.gmra.mxu1 %vm87_vm0, %v2227_v8  ;;  %1614 = vmatmul.msk.f32.gmra.mxu3 %vm87_vm0, %v2232_v9  ;;  %v1663_v28 = vor.u32 %v1975_v26, %v1662_v23  ;;  %v1991_v29 = vld [vmem:[#allocation5 + $0x94] sm:$0xf0]  ;;  %v2029_v32 = vld [vmem:[#allocation5 + $0x1c4] sm:$0xf0]  ;;  %v1654_v33 = vld [vmem:[#allocation5] sm:$0xf] }
  0x20   :  { %1031 = vmatpush.bf16.msra.mxu3 %v1887_v51  ;;  %884 = vmatpush.bf16.msrb.mxu0 %v1695_v52  ;;  %v1727_v30 = vor.u32 %v1991_v29, %v1726_v27  ;;  %v1973_v34 = vld [vmem:[#allocation5 + $0x4] sm:$0xf0]  ;;  %v1718_v35 = vld [vmem:[#allocation5 + $0x80] sm:$0xf]  ;;  %v1806_v39 = vld [vmem:[#allocation5 + $0x130] sm:$0xf] }
  0x21   :  { %933 = vmatpush.bf16.msrb.mxu1 %v1759_v55  ;;  %983 = vmatpush.bf16.msra.mxu2 %v1815_v22  ;;  %v1989_v36 = vld [vmem:[#allocation5 + $0x84] sm:$0xf0]  ;;  %v1655_v37 = vor.u32 %v1973_v34, %v1654_v33  ;;  %v2011_v40 = vld [vmem:[#allocation5 + $0x134] sm:$0xf0]  ;;  %v1870_v42 = vld [vmem:[#allocation5 + $0x1b0] sm:$0xf] }
  0x22   :  { %v1719_v38 = vor.u32 %v1989_v36, %v1718_v35  ;;  %v1807_v41 = vor.u32 %v2011_v40, %v1806_v39  ;;  %v2027_v43 = vld [vmem:[#allocation5 + $0x1b4] sm:$0xf0]  ;;  %v2365_v44 = vld [vmem:[%s2873_s2] sm:$0xf]  ;;  %v2009_v48 = vld [vmem:[#allocation5 + $0x124] sm:$0xf0] }
  0x23   :  { %v2368_v46 = vperm.slane %v2365_v44, 1  ;;  %v2371_v47 = vperm.slane %v2365_v44, 0  ;;  %v2025_v62 = vld [vmem:[#allocation5 + $0x1a4] sm:$0xf0]  ;;  %v1790_v26 = vld [vmem:[#allocation5 + $0x110] sm:$0xf] }
  0x24   :  { %885 = vmatpush.bf16.msrb.mxu0 %v1687_v59  ;;  %v2007_v27 = vld [vmem:[#allocation5 + $0x114] sm:$0xf0]  ;;  %v1854_v40 = vld [vmem:[#allocation5 + $0x190] sm:$0xf] }
  0x25   :  { %934 = vmatpush.bf16.msrb.mxu1 %v1751_v61  ;;  %984 = vmatpush.bf16.msra.mxu2 %v1807_v41  ;;  %v1862_v61 = vld [vmem:[#allocation5 + $0x1a0] sm:$0xf]  ;;  %v2023_v41 = vld [vmem:[#allocation5 + $0x194] sm:$0xf0] }
  0x26   :  { %1591 = vmatmul.msk.f32.gmra.mxu0 %vm87_vm0, %v2245_v10  ;;  %1599 = vmatmul.msk.f32.gmra.mxu2 %vm87_vm0, %v2250_v11 }
  0x27   :  { %1607 = vmatmul.msk.f32.gmra.mxu1 %vm87_vm0, %v2245_v10  ;;  %1615 = vmatmul.msk.f32.gmra.mxu3 %vm87_vm0, %v2250_v11 }
  0x28   :  { %886 = vmatpush.bf16.msrb.mxu0 %v1679_v1 }
  0x2e   :  { %1592 = vmatmul.msk.f32.gmra.mxu0 %vm87_vm0, %v2263_v12  ;;  %1600 = vmatmul.msk.f32.gmra.mxu2 %vm87_vm0, %v2268_v13 }
  0x2f   :  { %1608 = vmatmul.msk.f32.gmra.mxu1 %vm87_vm0, %v2263_v12  ;;  %1616 = vmatmul.msk.f32.gmra.mxu3 %vm87_vm0, %v2268_v13 }
  0x36   :  { %1593 = vmatmul.msk.f32.gmra.mxu0 %vm87_vm0, %v2281_v14  ;;  %1601 = vmatmul.msk.f32.gmra.mxu2 %vm87_vm0, %v2286_v15 }
  0x37   :  { %1609 = vmatmul.msk.f32.gmra.mxu1 %vm87_vm0, %v2281_v14  ;;  %1617 = vmatmul.msk.f32.gmra.mxu3 %vm87_vm0, %v2286_v15 }
  0x3e   :  { %1594 = vmatmul.msk.f32.gmra.mxu0 %vm87_vm0, %v2299_v16  ;;  %1602 = vmatmul.msk.f32.gmra.mxu2 %vm87_vm0, %v2304_v17 }
  0x3f   :  { %1610 = vmatmul.msk.f32.gmra.mxu1 %vm87_vm0, %v2299_v16  ;;  %1618 = vmatmul.msk.f32.gmra.mxu3 %vm87_vm0, %v2304_v17 }
  0x46   :  { %1595 = vmatmul.msk.f32.gmra.mxu0 %vm87_vm0, %v2317_v24  ;;  %1603 = vmatmul.msk.f32.gmra.mxu2 %vm87_vm0, %v2322_v25 }
  0x47   :  { %1611 = vmatmul.msk.f32.gmra.mxu1 %vm87_vm0, %v2317_v24  ;;  %1619 = vmatmul.msk.f32.gmra.mxu3 %vm87_vm0, %v2322_v25 }
  0x4e   :  { %1620 = vmatmul.msk.f32.vlgmr.msrb.gmra.mxu2 %vm87_vm0, %v2195_v2 }
  0x4f   :  { %1636 = vmatmul.msk.f32.vlgmr.msrb.gmra.mxu3 %vm87_vm0, %v2195_v2  ;;  %v1995_v2 = vld [vmem:[#allocation5 + $0xb4] sm:$0xf0] }
  0x50   :  { %v1743_v4 = vor.u32 %v1995_v2, %v1742_v0  ;;  %v1863_v0 = vor.u32 %v2025_v62, %v1862_v61 }
  0x52   :  { %935 = vmatpush.bf16.msrb.mxu1 %v1743_v4 }
  0x56   :  { %1621 = vmatmul.msk.f32.gmra.mxu2 %vm87_vm0, %v58_v6 }
  0x57   :  { %1637 = vmatmul.msk.f32.gmra.mxu3 %vm87_vm0, %v58_v6  ;;  %v1977_v6 = vld [vmem:[#allocation5 + $0x24] sm:$0xf0] }
  0x58   :  { %v1671_v18 = vor.u32 %v1977_v6, %v1670_v5 }
  0x5a   :  { %887 = vmatpush.bf16.msrb.mxu0 %v1671_v18 }
  0x5e   :  { %1622 = vmatmul.msk.f32.gmra.mxu2 %vm87_vm0, %v2227_v8  ;;  %888 = vmatpush.bf16.msrb.mxu0 %v1663_v28 }
  0x5f   :  { %1638 = vmatmul.msk.f32.gmra.mxu3 %vm87_vm0, %v2227_v8  ;;  %v1734_v8 = vld [vmem:[#allocation5 + $0xa0] sm:$0xf] }
  0x62   :  { %889 = vmatpush.bf16.msrb.mxu0 %v1655_v37 }
  0x66   :  { %1623 = vmatmul.msk.f32.gmra.mxu2 %vm87_vm0, %v2245_v10 }
  0x67   :  { %1639 = vmatmul.msk.f32.gmra.mxu3 %vm87_vm0, %v2245_v10  ;;  %v1735_v10 = vor.u32 %v1993_v19, %v1734_v8 }
  0x69   :  { %936 = vmatpush.bf16.msrb.mxu1 %v1735_v10 }
  0x6d   :  { %937 = vmatpush.bf16.msrb.mxu1 %v1727_v30  ;;  %v1791_v30 = vor.u32 %v2007_v27, %v1790_v26 }
  0x6e   :  { %1624 = vmatmul.msk.f32.gmra.mxu2 %vm87_vm0, %v2263_v12 }
  0x6f   :  { %1640 = vmatmul.msk.f32.gmra.mxu3 %vm87_vm0, %v2263_v12  ;;  %v1879_v12 = vor.u32 %v2029_v32, %v1878_v31 }
  0x71   :  { %1032 = vmatpush.bf16.msra.mxu3 %v1879_v12  ;;  %938 = vmatpush.bf16.msrb.mxu1 %v1719_v38 }
  0x76   :  { %1625 = vmatmul.msk.f32.gmra.mxu2 %vm87_vm0, %v2281_v14 }
  0x77   :  { %1641 = vmatmul.msk.f32.gmra.mxu3 %vm87_vm0, %v2281_v14  ;;  %v1871_v14 = vor.u32 %v2027_v43, %v1870_v42  ;;  %v1855_v43 = vor.u32 %v2023_v41, %v1854_v40  ;;  %v2018_v41 = vld [vmem:[#allocation5 + $0x174] sm:$0xf] }
  0x79   :  { %1033 = vmatpush.bf16.msra.mxu3 %v1871_v14 }
  0x7d   :  { %1034 = vmatpush.bf16.msra.mxu3 %v1863_v0 }
  0x7e   :  { %1626 = vmatmul.msk.f32.gmra.mxu2 %vm87_vm0, %v2299_v16 }
  0x7f   :  { %1642 = vmatmul.msk.f32.gmra.mxu3 %vm87_vm0, %v2299_v16 }
  0x81   :  { %1035 = vmatpush.bf16.msra.mxu3 %v1855_v43 }
  0x86   :  { %1627 = vmatmul.msk.f32.gmra.mxu2 %vm87_vm0, %v2317_v24 }
  0x87   :  { %1643 = vmatmul.msk.f32.gmra.mxu3 %vm87_vm0, %v2317_v24  ;;  %v1798_v24 = vld [vmem:[#allocation5 + $0x120] sm:$0xf] }
  0x88   :  { %v1799_v50 = vor.u32 %v2009_v48, %v1798_v24 }
  0x8a   :  { %985 = vmatpush.bf16.msra.mxu2 %v1799_v50 }
  0x8b   :  { %v153_v16 = vpop.f32.mrf.mxu0 }
  0x8c   :  { %v218_v45 = vpop.f32.mrf.mxu1  ;;  %v154_v49 = vadd.f32 %v153_v16, %v2371_v47 }
  0x8d   :  { %v219_v51 = vadd.f32 %v218_v45, %v2368_v46 }
  0x8e   :  { %1628 = vmatmul.msk.f32.gmra.mxu2 %vm87_vm0, %v2200_v3  ;;  %v396_v57 = vmax.f32 %v154_v49, 0.0 }
  0x8f   :  { %1644 = vmatmul.msk.f32.gmra.mxu3 %vm87_vm0, %v2200_v3  ;;  %v397_v3 = vmax.f32 %v219_v51, 0.0  ;;  %986 = vmatpush.bf16.msra.mxu2 %v1791_v30 }
  0x91   :  { %v177_v52 = vpop.f32.mrf.mxu2 }
  0x92   :  { %v178_v53 = vadd.f32 %v177_v52, %v2371_v47  ;;  %v242_v54 = vpop.f32.mrf.mxu3 }
  0x93   :  { %v243_v55 = vadd.f32 %v242_v54, %v2368_v46  ;;  %v156_v56 = vpop.f32.mrf.mxu0 }
  0x94   :  { %v157_v58 = vadd.f32 %v156_v56, %v2371_v47  ;;  %v221_v59 = vpop.f32.mrf.mxu1  ;;  %v428_v10 = vmax.f32 %v178_v53, 0.0  ;;  %v1782_v56 = vld [vmem:[#allocation5 + $0x100] sm:$0xf] }
  0x95   :  { %v222_v60 = vadd.f32 %v221_v59, %v2368_v46 }
  0x96   :  { %v400_v63 = vmax.f32 %v157_v58, 0.0  ;;  %1629 = vmatmul.msk.f32.gmra.mxu2 %vm87_vm0, %v2216_v7 }
  0x97   :  { %v401_v1 = vmax.f32 %v222_v60, 0.0  ;;  %1645 = vmatmul.msk.f32.gmra.mxu3 %vm87_vm0, %v2216_v7  ;;  %v429_v7 = vmax.f32 %v243_v55, 0.0 }
  0x98   :  { %v2387_v2 = vpack.c.bf16 %v400_v63, %v396_v57  ;;  %v2005_v57 = vld [vmem:[#allocation5 + $0x104] sm:$0xf0] }
  0x99   :  { %v180_v4 = vpop.f32.mrf.mxu2  ;;  %v2389_v5 = vpack.c.bf16 %v401_v1, %v397_v3  ;;  %v1783_v58 = vor.u32 %v2005_v57, %v1782_v56  ;;  %v2034_v57 = vld [vmem:[#allocation5 + $0x1f4] sm:$0xf] }
  0x9a   :  { %v181_v6 = vadd.f32 %v180_v4, %v2371_v47  ;;  %v245_v8 = vpop.f32.mrf.mxu3  ;;  %890 = vmatmul.bf16.vlgmr.msrb.gmra.mxu0 %v2387_v2 }
  0x9b   :  { %v246_v18 = vadd.f32 %v245_v8, %v2368_v46  ;;  %939 = vmatmul.bf16.vlgmr.msrb.gmra.mxu1 %v2389_v5  ;;  %v159_v19 = vpop.f32.mrf.mxu0  ;;  %987 = vmatpush.bf16.msra.mxu2 %v1783_v58  ;;  %v1904_v58 = vld [vmem:[#allocation5 + $0x1f8] sm:$0xf0] }
  0x9c   :  { %v432_v20 = vmax.f32 %v181_v6, 0.0  ;;  %v224_v21 = vpop.f32.mrf.mxu1  ;;  %v160_v29 = vadd.f32 %v159_v19, %v2371_v47 }
  0x9d   :  { %v433_v22 = vmax.f32 %v246_v18, 0.0  ;;  %v225_v31 = vadd.f32 %v224_v21, %v2368_v46 }
  0x9e   :  { %1630 = vmatmul.msk.f32.gmra.mxu2 %vm87_vm0, %v2232_v9  ;;  %v2397_v23 = vpack.c.bf16 %v432_v20, %v428_v10  ;;  %v404_v36 = vmax.f32 %v160_v29, 0.0  ;;  %v1846_v10 = vld [vmem:[#allocation5 + $0x180] sm:$0xf]  ;;  %v2021_v20 = vld [vmem:[#allocation5 + $0x184] sm:$0xf0] }
  0x9f   :  { %1646 = vmatmul.msk.f32.gmra.mxu3 %vm87_vm0, %v2232_v9  ;;  %v2401_v28 = vpack.c.bf16 %v433_v22, %v429_v7  ;;  %v405_v38 = vmax.f32 %v225_v31, 0.0  ;;  %v1847_v7 = vor.u32 %v2021_v20, %v1846_v10 }
  0xa1   :  { %v183_v32 = vpop.f32.mrf.mxu2  ;;  %1036 = vmatpush.bf16.msra.mxu3 %v1847_v7 }
  0xa2   :  { %v184_v33 = vadd.f32 %v183_v32, %v2371_v47  ;;  %v248_v12 = vpop.f32.mrf.mxu3 }
  0xa3   :  { %v249_v34 = vadd.f32 %v248_v12, %v2368_v46  ;;  %v162_v35 = vpop.f32.mrf.mxu0 }
  0xa4   :  { %v163_v9 = vadd.f32 %v162_v35, %v2371_v47  ;;  %v227_v37 = vpop.f32.mrf.mxu1  ;;  %v436_v52 = vmax.f32 %v184_v33, 0.0 }
  0xa5   :  { %v228_v39 = vadd.f32 %v227_v37, %v2368_v46 }
  0xa6   :  { %v408_v42 = vmax.f32 %v163_v9, 0.0  ;;  %1631 = vmatmul.msk.f32.gmra.mxu2 %vm87_vm0, %v2250_v11 }
  0xa7   :  { %v409_v14 = vmax.f32 %v228_v39, 0.0  ;;  %1647 = vmatmul.msk.f32.gmra.mxu3 %vm87_vm0, %v2250_v11  ;;  %v437_v11 = vmax.f32 %v249_v34, 0.0 }
  0xa8   :  { %v2413_v16 = vpack.c.bf16 %v408_v42, %v404_v36  ;;  %v1840_v42 = vld [vmem:[#allocation5 + $0x178] sm:$0xf0] }
  0xa9   :  { %v186_v45 = vpop.f32.mrf.mxu2  ;;  %v2415_v24 = vpack.c.bf16 %v409_v14, %v405_v38 }
  0xaa   :  { %v187_v48 = vadd.f32 %v186_v45, %v2371_v47  ;;  %v251_v49 = vpop.f32.mrf.mxu3  ;;  %895 = vmatmul.bf16.gmra.mxu0 %v2413_v16  ;;  %v1843_v45 = vor.u32 %v2018_v41, %v1840_v42 }
  0xab   :  { %v252_v50 = vadd.f32 %v251_v49, %v2368_v46  ;;  %944 = vmatmul.bf16.gmra.mxu1 %v2415_v24  ;;  %v165_v51 = vpop.f32.mrf.mxu0 }
  0xac   :  { %v440_v53 = vmax.f32 %v187_v48, 0.0  ;;  %v230_v54 = vpop.f32.mrf.mxu1  ;;  %v166_v60 = vadd.f32 %v165_v51, %v2371_v47  ;;  %1176 = vmatpush.bf16.msrb.mxu2 %v1843_v45 }
  0xad   :  { %v441_v55 = vmax.f32 %v252_v50, 0.0  ;;  %v231_v61 = vadd.f32 %v230_v54, %v2368_v46  ;;  %v1986_v54 = vld [vmem:[#allocation5 + $0x74] sm:$0xf] }
  0xae   :  { %1632 = vmatmul.msk.f32.gmra.mxu2 %vm87_vm0, %v2268_v13  ;;  %v2423_v59 = vpack.c.bf16 %v440_v53, %v436_v52  ;;  %v412_v6 = vmax.f32 %v166_v60, 0.0 }
  0xaf   :  { %1648 = vmatmul.msk.f32.gmra.mxu3 %vm87_vm0, %v2268_v13  ;;  %v2427_v3 = vpack.c.bf16 %v441_v55, %v437_v11  ;;  %v413_v19 = vmax.f32 %v231_v61, 0.0  ;;  %v1712_v11 = vld [vmem:[#allocation5 + $0x78] sm:$0xf0]  ;;  %v1907_v61 = vor.u32 %v2034_v57, %v1904_v58 }
  0xb0   :  { %v1715_v56 = vor.u32 %v1986_v54, %v1712_v11  ;;  %v2014_v54 = vld [vmem:[#allocation5 + $0x154] sm:$0xf]  ;;  %v1824_v11 = vld [vmem:[#allocation5 + $0x158] sm:$0xf0] }
  0xb1   :  { %v189_v62 = vpop.f32.mrf.mxu2  ;;  %1225 = vmatpush.bf16.msrb.mxu3 %v1907_v61  ;;  %v1827_v57 = vor.u32 %v2014_v54, %v1824_v11  ;;  %v1696_v58 = vld [vmem:[#allocation5 + $0x58] sm:$0xf0]  ;;  %v2012_v54 = vld [vmem:[#allocation5 + $0x144] sm:$0xf]  ;;  %v1816_v11 = vld [vmem:[#allocation5 + $0x148] sm:$0xf0] }
  0xb2   :  { %v190_v63 = vadd.f32 %v189_v62, %v2371_v47  ;;  %v254_v0 = vpop.f32.mrf.mxu3  ;;  %v2002_v62 = vld [vmem:[#allocation5 + $0xf4] sm:$0xf]  ;;  %1078 = vmatpush.bf16.msra.mxu0 %v1715_v56  ;;  %v1760_v61 = vld [vmem:[#allocation5 + $0xd8] sm:$0xf0] }
  0xb3   :  { %v255_v1 = vadd.f32 %v254_v0, %v2368_v46  ;;  %v168_v4 = vpop.f32.mrf.mxu0 }
  0xb4   :  { %v169_v8 = vadd.f32 %v168_v4, %v2371_v47  ;;  %v233_v18 = vpop.f32.mrf.mxu1  ;;  %v444_v12 = vmax.f32 %v190_v63, 0.0  ;;  %v1776_v63 = vld [vmem:[#allocation5 + $0xf8] sm:$0xf0] }
  0xb5   :  { %v234_v13 = vadd.f32 %v233_v18, %v2368_v46 }
  0xb6   :  { %v416_v21 = vmax.f32 %v169_v8, 0.0  ;;  %1633 = vmatmul.msk.f32.gmra.mxu2 %vm87_vm0, %v2286_v15 }
  0xb7   :  { %v417_v22 = vmax.f32 %v234_v13, 0.0  ;;  %1649 = vmatmul.msk.f32.gmra.mxu3 %vm87_vm0, %v2286_v15  ;;  %v445_v15 = vmax.f32 %v255_v1, 0.0  ;;  %v1779_v1 = vor.u32 %v2002_v62, %v1776_v63 }
  0xb8   :  { %v2439_v26 = vpack.c.bf16 %v416_v21, %v412_v6 }
  0xb9   :  { %v192_v27 = vpop.f32.mrf.mxu2  ;;  %v2441_v29 = vpack.c.bf16 %v417_v22, %v413_v19  ;;  %1127 = vmatpush.bf16.msra.mxu1 %v1779_v1  ;;  %v2030_v1 = vld [vmem:[#allocation5 + $0x1d4] sm:$0xf] }
  0xba   :  { %v193_v30 = vadd.f32 %v192_v27, %v2371_v47  ;;  %v257_v31 = vpop.f32.mrf.mxu3  ;;  %900 = vmatmul.bf16.gmra.mxu0 %v2439_v26  ;;  %v2016_v27 = vld [vmem:[#allocation5 + $0x164] sm:$0xf] }
  0xbb   :  { %v258_v32 = vadd.f32 %v257_v31, %v2368_v46  ;;  %949 = vmatmul.bf16.gmra.mxu1 %v2441_v29  ;;  %v171_v33 = vpop.f32.mrf.mxu0 }
  0xbc   :  { %v448_v34 = vmax.f32 %v193_v30, 0.0  ;;  %v236_v35 = vpop.f32.mrf.mxu1  ;;  %v172_v38 = vadd.f32 %v171_v33, %v2371_v47  ;;  %v1832_v30 = vld [vmem:[#allocation5 + $0x168] sm:$0xf0]  ;;  %v1984_v33 = vld [vmem:[#allocation5 + $0x64] sm:$0xf] }
  0xbd   :  { %v449_v36 = vmax.f32 %v258_v32, 0.0  ;;  %v237_v39 = vadd.f32 %v236_v35, %v2368_v46  ;;  %v1835_v31 = vor.u32 %v2016_v27, %v1832_v30  ;;  %v2478_v32 = vperm.slane %v2365_v44, 2  ;;  %v2032_v35 = vld [vmem:[#allocation5 + $0x1e4] sm:$0xf] }
  0xbe   :  { %1634 = vmatmul.msk.f32.gmra.mxu2 %vm87_vm0, %v2304_v17  ;;  %v2449_v9 = vpack.c.bf16 %v448_v34, %v444_v12  ;;  %v420_v50 = vmax.f32 %v172_v38, 0.0  ;;  %v1704_v12 = vld [vmem:[#allocation5 + $0x68] sm:$0xf0] }
  0xbf   :  { %1650 = vmatmul.msk.f32.gmra.mxu3 %vm87_vm0, %v2304_v17  ;;  %v2453_v37 = vpack.c.bf16 %v449_v36, %v445_v15  ;;  %v421_v52 = vmax.f32 %v237_v39, 0.0  ;;  %1177 = vmatpush.bf16.msrb.mxu2 %v1835_v31  ;;  %v1707_v34 = vor.u32 %v1984_v33, %v1704_v12  ;;  %v1896_v15 = vld [vmem:[#allocation5 + $0x1e8] sm:$0xf0]  ;;  %v2000_v36 = vld [vmem:[#allocation5 + $0xe4] sm:$0xf] }
  0xc0   :  { %v1899_v38 = vor.u32 %v2032_v35, %v1896_v15  ;;  %v1768_v39 = vld [vmem:[#allocation5 + $0xe8] sm:$0xf0]  ;;  %v1680_v31 = vld [vmem:[#allocation5 + $0x38] sm:$0xf0]  ;;  %v1994_v33 = vld [vmem:[#allocation5 + $0xb4] sm:$0xf] }
  0xc1   :  { %v195_v40 = vpop.f32.mrf.mxu2  ;;  %1079 = vmatpush.bf16.msra.mxu0 %v1707_v34  ;;  %v1771_v41 = vor.u32 %v2000_v36, %v1768_v39  ;;  %v1744_v15 = vld [vmem:[#allocation5 + $0xb8] sm:$0xf0] }
  0xc2   :  { %v196_v43 = vadd.f32 %v195_v40, %v2371_v47  ;;  %v260_v14 = vpop.f32.mrf.mxu3  ;;  %1226 = vmatpush.bf16.msrb.mxu3 %v1899_v38  ;;  %v1747_v38 = vor.u32 %v1994_v33, %v1744_v15 }
  0xc3   :  { %v261_v48 = vadd.f32 %v260_v14, %v2368_v46  ;;  %v174_v49 = vpop.f32.mrf.mxu0  ;;  %1128 = vmatpush.bf16.msra.mxu1 %v1771_v41  ;;  %1178 = vmatpush.bf16.msrb.mxu2 %v1827_v57  ;;  %v1819_v57 = vor.u32 %v2012_v54, %v1816_v11 }
  0xc4   :  { %v175_v51 = vadd.f32 %v174_v49, %v2371_v47  ;;  %v239_v17 = vpop.f32.mrf.mxu1 }
  0xc5   :  { %v240_v53 = vadd.f32 %v239_v17, %v2368_v46  ;;  %v453_v10 = vmax.f32 %v261_v48, 0.0 }
  0xc6   :  { %v424_v55 = vmax.f32 %v175_v51, 0.0  ;;  %1635 = vmatmul.msk.f32.gmra.mxu2 %vm87_vm0, %v2322_v25 }
  0xc7   :  { %v425_v60 = vmax.f32 %v240_v53, 0.0  ;;  %1651 = vmatmul.msk.f32.gmra.mxu3 %vm87_vm0, %v2322_v25  ;;  %v452_v25 = vmax.f32 %v196_v43, 0.0  ;;  %1179 = vmatpush.bf16.msrb.mxu2 %v1819_v57 }
  0xc8   :  { %v2465_v0 = vpack.c.bf16 %v424_v55, %v420_v50  ;;  %v1982_v55 = vld [vmem:[#allocation5 + $0x54] sm:$0xf] }
  0xc9   :  { %v198_v4 = vpop.f32.mrf.mxu2  ;;  %v2467_v6 = vpack.c.bf16 %v425_v60, %v421_v52  ;;  %v1998_v60 = vld [vmem:[#allocation5 + $0xd4] sm:$0xf]  ;;  %v1699_v62 = vor.u32 %v1982_v55, %v1696_v58  ;;  %v1664_v58 = vld [vmem:[#allocation5 + $0x18] sm:$0xf0] }
  0xca   :  { %v199_v8 = vadd.f32 %v198_v4, %v2371_v47  ;;  %v263_v18 = vpop.f32.mrf.mxu3  ;;  %905 = vmatmul.bf16.gmra.mxu0 %v2465_v0  ;;  %v1763_v63 = vor.u32 %v1998_v60, %v1760_v61  ;;  %v1888_v4 = vld [vmem:[#allocation5 + $0x1d8] sm:$0xf0]  ;;  %v1974_v55 = vld [vmem:[#allocation5 + $0x14] sm:$0xf] }
  0xcb   :  { %v264_v19 = vadd.f32 %v263_v18, %v2368_v46  ;;  %954 = vmatmul.bf16.gmra.mxu1 %v2467_v6  ;;  %v2481_v46 = vperm.slane %v2365_v44, 3  ;;  %1080 = vmatpush.bf16.msra.mxu0 %v1699_v62  ;;  %v1980_v18 = vld [vmem:[#allocation5 + $0x44] sm:$0xf]  ;;  %v1990_v60 = vld [vmem:[#allocation5 + $0x94] sm:$0xf]  ;;  %v1667_v62 = vor.u32 %v1974_v55, %v1664_v58 }
  0xcc   :  { %v456_v13 = vmax.f32 %v199_v8, 0.0  ;;  %1129 = vmatpush.bf16.msra.mxu1 %v1763_v63  ;;  %v1891_v8 = vor.u32 %v2030_v1, %v1888_v4  ;;  %v1728_v61 = vld [vmem:[#allocation5 + $0x98] sm:$0xf0]  ;;  %v2028_v1 = vld [vmem:[#allocation5 + $0x1c4] sm:$0xf] }
  0xcd   :  { %v457_v20 = vmax.f32 %v264_v19, 0.0  ;;  %v1688_v19 = vld [vmem:[#allocation5 + $0x48] sm:$0xf0]  ;;  %v1731_v63 = vor.u32 %v1990_v60, %v1728_v61 }
  0xce   :  { %v2473_v21 = vpack.c.bf16 %v456_v13, %v452_v25  ;;  %v1996_v25 = vld [vmem:[#allocation5 + $0xc4] sm:$0xf]  ;;  %v1691_v13 = vor.u32 %v1980_v18, %v1688_v19  ;;  %1227 = vmatpush.bf16.msrb.mxu3 %v1891_v8  ;;  %v1880_v4 = vld [vmem:[#allocation5 + $0x1c8] sm:$0xf0] }
  0xcf   :  { %v2475_v7 = vpack.c.bf16 %v457_v20, %v453_v10  ;;  %v1752_v10 = vld [vmem:[#allocation5 + $0xc8] sm:$0xf0]  ;;  %v1883_v8 = vor.u32 %v2028_v1, %v1880_v4  ;;  %v1972_v18 = vld [vmem:[#allocation5 + $0x4] sm:$0xf] }
  0xd0   :  { %1081 = vmatpush.bf16.msra.mxu0 %v1691_v13  ;;  %v1656_v19 = vld [vmem:[#allocation5 + $0x8] sm:$0xf0]  ;;  %v1988_v13 = vld [vmem:[#allocation5 + $0x84] sm:$0xf] }
  0xd1   :  { %v283_v22 = vpop.f32.mrf.mxu2  ;;  %v2008_v4 = vld [vmem:[#allocation5 + $0x124] sm:$0xf] }
  0xd2   :  { %v348_v47 = vpop.f32.mrf.mxu3  ;;  %v284_v40 = vadd.f32 %v283_v22, %v2478_v32  ;;  %v1755_v22 = vor.u32 %v1996_v25, %v1752_v10  ;;  %v1659_v25 = vor.u32 %v1972_v18, %v1656_v19  ;;  %v1720_v10 = vld [vmem:[#allocation5 + $0x88] sm:$0xf0]  ;;  %1228 = vmatpush.bf16.msrb.mxu3 %v1883_v8  ;;  %v2024_v19 = vld [vmem:[#allocation5 + $0x1a4] sm:$0xf] }
  0xd3   :  { %v349_v42 = vadd.f32 %v348_v47, %v2481_v46  ;;  %v1978_v47 = vld [vmem:[#allocation5 + $0x34] sm:$0xf]  ;;  %v1800_v8 = vld [vmem:[#allocation5 + $0x128] sm:$0xf0] }
  0xd4   :  { %v398_v48 = vmax.f32 %v284_v40, 0.0  ;;  %1130 = vmatpush.bf16.msra.mxu1 %v1755_v22  ;;  %v1683_v35 = vor.u32 %v1978_v47, %v1680_v31  ;;  %v1723_v22 = vor.u32 %v1988_v13, %v1720_v10  ;;  %v1803_v18 = vor.u32 %v2008_v4, %v1800_v8 }
  0xd5   :  { %v399_v50 = vmax.f32 %v349_v42, 0.0 }
  0xd6   :  { %1082 = vmatpush.bf16.msra.mxu0 %v1683_v35 }
  0xd8   :  { %1131 = vmatpush.bf16.msra.mxu1 %v1747_v38 }
  0xd9   :  { %v286_v43 = vpop.f32.mrf.mxu2 }
  0xda   :  { %v287_v14 = vadd.f32 %v286_v43, %v2478_v32  ;;  %v351_v44 = vpop.f32.mrf.mxu3  ;;  %910 = vmatmul.bf16.gmra.mxu0 %v2397_v23  ;;  %v1976_v43 = vld [vmem:[#allocation5 + $0x24] sm:$0xf] }
  0xdb   :  { %v352_v45 = vadd.f32 %v351_v44, %v2481_v46  ;;  %959 = vmatmul.bf16.gmra.mxu1 %v2401_v28 }
  0xdc   :  { %v402_v49 = vmax.f32 %v287_v14, 0.0  ;;  %v1672_v14 = vld [vmem:[#allocation5 + $0x28] sm:$0xf0] }
  0xdd   :  { %v403_v51 = vmax.f32 %v352_v45, 0.0  ;;  %v1675_v45 = vor.u32 %v1976_v43, %v1672_v14  ;;  %v2026_v14 = vld [vmem:[#allocation5 + $0x1b4] sm:$0xf] }
  0xde   :  { %v2489_v17 = vpack.c.bf16 %v402_v49, %v398_v48  ;;  %v1992_v48 = vld [vmem:[#allocation5 + $0xa4] sm:$0xf]  ;;  %v1736_v49 = vld [vmem:[#allocation5 + $0xa8] sm:$0xf0] }
  0xdf   :  { %v2491_v52 = vpack.c.bf16 %v403_v51, %v399_v50  ;;  %v1739_v51 = vor.u32 %v1992_v48, %v1736_v49  ;;  %1083 = vmatpush.bf16.msra.mxu0 %v1675_v45  ;;  %v1872_v45 = vld [vmem:[#allocation5 + $0x1b8] sm:$0xf0] }
  0xe0   :  { %988 = vmatmul.bf16.vlgmr.msra.gmra.mxu2 %v2489_v17  ;;  %v1875_v48 = vor.u32 %v2026_v14, %v1872_v45  ;;  %v2022_v45 = vld [vmem:[#allocation5 + $0x194] sm:$0xf] }
  0xe1   :  { %1037 = vmatmul.bf16.vlgmr.msra.gmra.mxu3 %v2491_v52  ;;  %v289_v53 = vpop.f32.mrf.mxu2  ;;  %1132 = vmatpush.bf16.msra.mxu1 %v1739_v51 }
  0xe2   :  { %v354_v56 = vpop.f32.mrf.mxu3  ;;  %v290_v20 = vadd.f32 %v289_v53, %v2478_v32  ;;  %1229 = vmatpush.bf16.msrb.mxu3 %v1875_v48  ;;  %v1856_v48 = vld [vmem:[#allocation5 + $0x198] sm:$0xf0] }
  0xe3   :  { %v355_v27 = vadd.f32 %v354_v56, %v2481_v46  ;;  %1084 = vmatpush.bf16.msra.mxu0 %v1667_v62 }
  0xe4   :  { %v406_v39 = vmax.f32 %v290_v20, 0.0 }
  0xe5   :  { %v407_v41 = vmax.f32 %v355_v27, 0.0  ;;  %1133 = vmatpush.bf16.msra.mxu1 %v1731_v63 }
  0xe7   :  { %1085 = vmatpush.bf16.msra.mxu0 %v1659_v25  ;;  %v1864_v25 = vld [vmem:[#allocation5 + $0x1a8] sm:$0xf0] }
  0xe8   :  { %v1867_v13 = vor.u32 %v2024_v19, %v1864_v25 }
  0xe9   :  { %v292_v30 = vpop.f32.mrf.mxu2  ;;  %1134 = vmatpush.bf16.msra.mxu1 %v1723_v22 }
  0xea   :  { %v293_v12 = vadd.f32 %v292_v30, %v2478_v32  ;;  %v357_v34 = vpop.f32.mrf.mxu3  ;;  %915 = vmatmul.bf16.gmra.mxu0 %v2423_v59  ;;  %1230 = vmatpush.bf16.msrb.mxu3 %v1867_v13  ;;  %v2004_v13 = vld [vmem:[#allocation5 + $0x104] sm:$0xf] }
  0xeb   :  { %v358_v36 = vadd.f32 %v357_v34, %v2481_v46  ;;  %964 = vmatmul.bf16.gmra.mxu1 %v2427_v3 }
  0xec   :  { %v410_v40 = vmax.f32 %v293_v12, 0.0 }
  0xed   :  { %v411_v42 = vmax.f32 %v358_v36, 0.0 }
  0xee   :  { %v2501_v44 = vpack.c.bf16 %v410_v40, %v406_v39 }
  0xef   :  { %v2503_v50 = vpack.c.bf16 %v411_v42, %v407_v41  ;;  %v2010_v41 = vld [vmem:[#allocation5 + $0x134] sm:$0xf]  ;;  %v1808_v42 = vld [vmem:[#allocation5 + $0x138] sm:$0xf0] }
  0xf0   :  { %993 = vmatmul.bf16.gmra.mxu2 %v2501_v44  ;;  %v1811_v43 = vor.u32 %v2010_v41, %v1808_v42 }
  0xf1   :  { %1042 = vmatmul.bf16.gmra.mxu3 %v2503_v50  ;;  %v295_v53 = vpop.f32.mrf.mxu2 }
  0xf2   :  { %v360_v56 = vpop.f32.mrf.mxu3  ;;  %v296_v20 = vadd.f32 %v295_v53, %v2478_v32  ;;  %1180 = vmatpush.bf16.msrb.mxu2 %v1811_v43  ;;  %v2006_v43 = vld [vmem:[#allocation5 + $0x114] sm:$0xf] }
  0xf3   :  { %v361_v27 = vadd.f32 %v360_v56, %v2481_v46 }
  0xf4   :  { %v414_v12 = vmax.f32 %v296_v20, 0.0 }
  0xf5   :  { %v415_v35 = vmax.f32 %v361_v27, 0.0 }
  0xf6   :  { %1181 = vmatpush.bf16.msrb.mxu2 %v1803_v18 }
  0xf9   :  { %v298_v30 = vpop.f32.mrf.mxu2 }
  0xfa   :  { %v299_v47 = vadd.f32 %v298_v30, %v2478_v32  ;;  %v363_v31 = vpop.f32.mrf.mxu3  ;;  %920 = vmatmul.bf16.gmra.mxu0 %v2449_v9 }
  0xfb   :  { %v364_v33 = vadd.f32 %v363_v31, %v2481_v46  ;;  %969 = vmatmul.bf16.gmra.mxu1 %v2453_v37 }
  0xfc   :  { %v418_v34 = vmax.f32 %v299_v47, 0.0 }
  0xfd   :  { %v419_v15 = vmax.f32 %v364_v33, 0.0 }
  0xfe   :  { %v2513_v36 = vpack.c.bf16 %v418_v34, %v414_v12 }
  0xff   :  { %v2515_v38 = vpack.c.bf16 %v419_v15, %v415_v35 }
 0x100   :  { %998 = vmatmul.bf16.gmra.mxu2 %v2513_v36 }
 0x101   :  { %1047 = vmatmul.bf16.gmra.mxu3 %v2515_v38  ;;  %v301_v39 = vpop.f32.mrf.mxu2 }
 0x102   :  { %v366_v40 = vpop.f32.mrf.mxu3  ;;  %v302_v49 = vadd.f32 %v301_v39, %v2478_v32 }
 0x103   :  { %v367_v51 = vadd.f32 %v366_v40, %v2481_v46 }
 0x104   :  { %v422_v56 = vmax.f32 %v302_v49, 0.0  ;;  %v1859_v49 = vor.u32 %v2022_v45, %v1856_v48 }
 0x105   :  { %v423_v58 = vmax.f32 %v367_v51, 0.0 }
 0x106   :  { %1231 = vmatpush.bf16.msrb.mxu3 %v1859_v49 }
 0x109   :  { %v304_v53 = vpop.f32.mrf.mxu2 }
 0x10a   :  { %v305_v54 = vadd.f32 %v304_v53, %v2478_v32  ;;  %v369_v11 = vpop.f32.mrf.mxu3  ;;  %925 = vmatmul.bf16.gmra.mxu0 %v2473_v21 }
 0x10b   :  { %v370_v55 = vadd.f32 %v369_v11, %v2481_v46  ;;  %974 = vmatmul.bf16.gmra.mxu1 %v2475_v7 }
 0x10c   :  { %v426_v57 = vmax.f32 %v305_v54, 0.0 }
 0x10d   :  { %v427_v60 = vmax.f32 %v370_v55, 0.0 }
 0x10e   :  { %v2525_v61 = vpack.c.bf16 %v426_v57, %v422_v56 }
 0x10f   :  { %v2527_v62 = vpack.c.bf16 %v427_v60, %v423_v58 }
 0x110   :  { %1003 = vmatmul.bf16.gmra.mxu2 %v2525_v61 }
 0x111   :  { %1052 = vmatmul.bf16.gmra.mxu3 %v2527_v62  ;;  %v307_v63 = vpop.f32.mrf.mxu2 }
 0x112   :  { %v372_v1 = vpop.f32.mrf.mxu3  ;;  %v308_v20 = vadd.f32 %v307_v63, %v2478_v32 }
 0x113   :  { %v373_v22 = vadd.f32 %v372_v1, %v2481_v46 }
 0x114   :  { %v430_v33 = vmax.f32 %v308_v20, 0.0  ;;  %v2020_v20 = vld [vmem:[#allocation5 + $0x184] sm:$0xf] }
 0x115   :  { %v431_v34 = vmax.f32 %v373_v22, 0.0 }
 0x117   :  { %v2531_v10 = vpop.f32.mrf.mxu0 }
 0x119   :  { %v310_v27 = vpop.f32.mrf.mxu2 }
 0x11a   :  { %v311_v30 = vadd.f32 %v310_v27, %v2478_v32  ;;  %v375_v47 = vpop.f32.mrf.mxu3  ;;  %1086 = vmatmul.bf16.vlgmr.msra.gmra.mxu0 %v2387_v2  ;;  %v2547_v2 = vpop.f32.mrf.mxu1  ;;  %v1848_v27 = vld [vmem:[#allocation5 + $0x188] sm:$0xf0] }
 0x11b   :  { %v376_v31 = vadd.f32 %v375_v47, %v2481_v46  ;;  %1135 = vmatmul.bf16.vlgmr.msra.gmra.mxu1 %v2389_v5  ;;  %v1792_v5 = vld [vmem:[#allocation5 + $0x118] sm:$0xf0] }
 0x11c   :  { %v434_v12 = vmax.f32 %v311_v30, 0.0  ;;  %v1795_v14 = vor.u32 %v2006_v43, %v1792_v5  ;;  %v1851_v30 = vor.u32 %v2020_v20, %v1848_v27 }
 0x11d   :  { %v435_v35 = vmax.f32 %v376_v31, 0.0 }
 0x11e   :  { %v2539_v15 = vpack.c.bf16 %v434_v12, %v430_v33  ;;  %1182 = vmatpush.bf16.msrb.mxu2 %v1795_v14  ;;  %1232 = vmatpush.bf16.msrb.mxu3 %v1851_v30  ;;  %v2042_v30 = vld [vmem:[%s2876_s5 + $0x30] sm:$0xff] }
 0x11f   :  { %v2541_v39 = vpop.f32.mrf.mxu0  ;;  %v2543_v40 = vpack.c.bf16 %v435_v35, %v431_v34 }
 0x120   :  { %1008 = vmatmul.bf16.gmra.mxu2 %v2539_v15 }
 0x121   :  { %1057 = vmatmul.bf16.gmra.mxu3 %v2543_v40  ;;  %v313_v41 = vpop.f32.mrf.mxu2 }
 0x122   :  { %v378_v42 = vpop.f32.mrf.mxu3  ;;  %v314_v53 = vadd.f32 %v313_v41, %v2478_v32  ;;  %v2557_v58 = vpop.f32.mrf.mxu1 }
 0x123   :  { %v379_v54 = vadd.f32 %v378_v42, %v2481_v46 }
 0x124   :  { %v438_v60 = vmax.f32 %v314_v53, 0.0 }
 0x125   :  { %v439_v1 = vmax.f32 %v379_v54, 0.0 }
 0x127   :  { %v2549_v51 = vpop.f32.mrf.mxu0 }
 0x129   :  { %v316_v11 = vpop.f32.mrf.mxu2 }
 0x12a   :  { %v317_v55 = vadd.f32 %v316_v11, %v2478_v32  ;;  %v381_v56 = vpop.f32.mrf.mxu3  ;;  %1091 = vmatmul.bf16.gmra.mxu0 %v2413_v16  ;;  %v2567_v47 = vpop.f32.mrf.mxu1 }
 0x12b   :  { %v382_v57 = vadd.f32 %v381_v56, %v2481_v46  ;;  %1140 = vmatmul.bf16.gmra.mxu1 %v2415_v24  ;;  %v1784_v24 = vld [vmem:[#allocation5 + $0x108] sm:$0xf0] }
 0x12c   :  { %v442_v63 = vmax.f32 %v317_v55, 0.0  ;;  %v1787_v22 = vor.u32 %v2004_v13, %v1784_v24 }
 0x12d   :  { %v443_v4 = vmax.f32 %v382_v57, 0.0 }
 0x12e   :  { %v2559_v8 = vpack.c.bf16 %v442_v63, %v438_v60  ;;  %1183 = vmatpush.bf16.msrb.mxu2 %v1787_v22 }
 0x12f   :  { %v2561_v18 = vpop.f32.mrf.mxu0  ;;  %v2563_v19 = vpack.c.bf16 %v443_v4, %v439_v1 }
 0x130   :  { %1013 = vmatmul.bf16.gmra.mxu2 %v2559_v8 }
 0x131   :  { %1062 = vmatmul.bf16.gmra.mxu3 %v2563_v19  ;;  %v319_v16 = vpop.f32.mrf.mxu2 }
 0x132   :  { %v384_v25 = vpop.f32.mrf.mxu3  ;;  %v320_v33 = vadd.f32 %v319_v16, %v2478_v32  ;;  %v2581_v53 = vpop.f32.mrf.mxu1 }
 0x133   :  { %v385_v12 = vadd.f32 %v384_v25, %v2481_v46 }
 0x134   :  { %v446_v43 = vmax.f32 %v320_v33, 0.0 }
 0x135   :  { %v447_v14 = vmax.f32 %v385_v12, 0.0 }
 0x137   :  { %v2569_v31 = vpop.f32.mrf.mxu0 }
 0x139   :  { %v322_v34 = vpop.f32.mrf.mxu2 }
 0x13a   :  { %v323_v35 = vadd.f32 %v322_v34, %v2478_v32  ;;  %v387_v41 = vpop.f32.mrf.mxu3  ;;  %1096 = vmatmul.bf16.gmra.mxu0 %v2439_v26  ;;  %v2589_v57 = vpop.f32.mrf.mxu1 }
 0x13b   :  { %v388_v42 = vadd.f32 %v387_v41, %v2481_v46  ;;  %1145 = vmatmul.bf16.gmra.mxu1 %v2441_v29 }
 0x13c   :  { %v450_v5 = vmax.f32 %v323_v35, 0.0 }
 0x13d   :  { %v451_v45 = vmax.f32 %v388_v42, 0.0 }
 0x13e   :  { %v2577_v48 = vpack.c.bf16 %v450_v5, %v446_v43  ;;  %v2038_v5 = vld [vmem:[%s2876_s5 + $0x10] sm:$0xff] }
 0x13f   :  { %v2579_v49 = vpack.c.bf16 %v451_v45, %v447_v14  ;;  %v2584_v54 = vpop.f32.mrf.mxu0  ;;  %v2037_v14 = vld [vmem:[%s2876_s5 + $0x8] sm:$0xff] }
 0x140   :  { %1018 = vmatmul.bf16.gmra.mxu2 %v2577_v48 }
 0x141   :  { %1067 = vmatmul.bf16.gmra.mxu3 %v2579_v49  ;;  %v325_v26 = vpop.f32.mrf.mxu2 }
 0x142   :  { %v390_v11 = vpop.f32.mrf.mxu3  ;;  %v326_v29 = vadd.f32 %v325_v26, %v2478_v32 }
 0x143   :  { %v391_v55 = vadd.f32 %v390_v11, %v2481_v46  ;;  %v2036_v11 = vld [vmem:[%s2876_s5] sm:$0xff] }
 0x144   :  { %v454_v16 = vmax.f32 %v326_v29, 0.0 }
 0x145   :  { %v455_v13 = vmax.f32 %v391_v55, 0.0 }
 0x147   :  { %v2593_v1 = vpop.f32.mrf.mxu0 }
 0x149   :  { %v328_v56 = vpop.f32.mrf.mxu2 }
 0x14a   :  { %v329_v60 = vadd.f32 %v328_v56, %v2478_v32  ;;  %v393_v63 = vpop.f32.mrf.mxu3  ;;  %1101 = vmatmul.bf16.gmra.mxu0 %v2465_v0  ;;  %v2043_v0 = vld [vmem:[%s2876_s5 + $0x38] sm:$0xff]  ;;  %v2606_v32 = vpop.f32.mrf.mxu1 }
 0x14b   :  { %v394_v4 = vadd.f32 %v393_v63, %v2481_v46  ;;  %1150 = vmatmul.bf16.gmra.mxu1 %v2467_v6  ;;  %1454 = vmatpush.bf16.msrb.mxu0 %v2043_v0  ;;  %v2051_v46 = vld [vmem:[%s2876_s5 + $0x78] sm:$0xff] }
 0x14c   :  { %v458_v25 = vmax.f32 %v329_v60, 0.0  ;;  %1503 = vmatpush.bf16.msrb.mxu1 %v2051_v46  ;;  %v2669_v60 = vld [vmem:[%s2875_s4] sm:$0x3] }
 0x14d   :  { %v459_v24 = vmax.f32 %v394_v4, 0.0 }
 0x14e   :  { %v2597_v20 = vpack.c.bf16 %v458_v25, %v454_v16 }
 0x14f   :  { %v2599_v22 = vpack.c.bf16 %v459_v24, %v455_v13  ;;  %v2608_v6 = vpop.f32.mrf.mxu0  ;;  %1455 = vmatpush.bf16.msrb.mxu0 %v2042_v30 }
 0x150   :  { %1023 = vmatmul.bf16.gmra.mxu2 %v2597_v20 }
 0x151   :  { %1072 = vmatmul.bf16.gmra.mxu3 %v2599_v22 }
 0x152   :  { %v2615_v27 = vpop.f32.mrf.mxu1 }
 0x157   :  { %v2620_v33 = vpop.f32.mrf.mxu0 }
 0x15a   :  { %1106 = vmatmul.bf16.gmra.mxu0 %v2397_v23  ;;  %v2041_v23 = vld [vmem:[%s2876_s5 + $0x28] sm:$0xff]  ;;  %v2630_v35 = vpop.f32.mrf.mxu1 }
 0x15b   :  { %1155 = vmatmul.bf16.gmra.mxu1 %v2401_v28  ;;  %1456 = vmatpush.bf16.msrb.mxu0 %v2041_v23  ;;  %v2040_v28 = vld [vmem:[%s2876_s5 + $0x20] sm:$0xff] }
 0x15f   :  { %1457 = vmatpush.bf16.msrb.mxu0 %v2040_v28  ;;  %v2635_v41 = vpop.f32.mrf.mxu0 }
 0x160   :  { %1184 = vmatmul.bf16.vlgmr.msrb.gmra.mxu2 %v2489_v17  ;;  %v2050_v17 = vld [vmem:[%s2876_s5 + $0x70] sm:$0xff] }
 0x161   :  { %1233 = vmatmul.bf16.vlgmr.msrb.gmra.mxu3 %v2491_v52  ;;  %1504 = vmatpush.bf16.msrb.mxu1 %v2050_v17  ;;  %v2039_v52 = vld [vmem:[%s2876_s5 + $0x18] sm:$0xff] }
 0x163   :  { %v989_v12 = vpop.f32.mrf.mxu2  ;;  %1458 = vmatpush.bf16.msrb.mxu0 %v2039_v52 }
 0x164   :  { %v1038_v34 = vpop.f32.mrf.mxu3 }
 0x167   :  { %1459 = vmatpush.bf16.msrb.mxu0 %v2038_v5  ;;  %v2652_v45 = vpop.f32.mrf.mxu0 }
 0x16a   :  { %1111 = vmatmul.bf16.gmra.mxu0 %v2423_v59  ;;  %v2647_v59 = vpop.f32.mrf.mxu1 }
 0x16b   :  { %1160 = vmatmul.bf16.gmra.mxu1 %v2427_v3  ;;  %v991_v42 = vpop.f32.mrf.mxu2  ;;  %1460 = vmatpush.bf16.msrb.mxu0 %v2037_v14 }
 0x16c   :  { %v1040_v43 = vpop.f32.mrf.mxu3 }
 0x16f   :  { %1461 = vmatpush.bf16.msrb.mxu0 %v2036_v11  ;;  %v2664_v56 = vpop.f32.mrf.mxu0 }
 0x170   :  { %1189 = vmatmul.bf16.gmra.mxu2 %v2501_v44  ;;  %v2049_v44 = vld [vmem:[%s2876_s5 + $0x68] sm:$0xff] }
 0x171   :  { %1238 = vmatmul.bf16.gmra.mxu3 %v2503_v50  ;;  %1505 = vmatpush.bf16.msrb.mxu1 %v2049_v44 }
 0x172   :  { %v2662_v29 = vpop.f32.mrf.mxu1 }
 0x173   :  { %v994_v3 = vpop.f32.mrf.mxu2 }
 0x174   :  { %v1043_v26 = vpop.f32.mrf.mxu3 }
 0x177   :  { %v2682_v25 = vpop.f32.mrf.mxu0 }
 0x17a   :  { %1116 = vmatmul.bf16.gmra.mxu0 %v2449_v9  ;;  %v2674_v9 = vperm.slane %v2669_v60, 0  ;;  %v2680_v16 = vpop.f32.mrf.mxu1 }
 0x17b   :  { %1165 = vmatmul.bf16.gmra.mxu1 %v2453_v37  ;;  %v996_v50 = vpop.f32.mrf.mxu2 }
 0x17c   :  { %v1045_v55 = vpop.f32.mrf.mxu3  ;;  %v894_v4 = vadd.f32 %v2541_v39, %v2674_v9  ;;  %v892_v13 = vadd.f32 %v2531_v10, %v2674_v9 }
 0x17e   :  { %v941_v39 = vadd.f32 %v2547_v2, %v892_v13  ;;  %v899_v2 = vadd.f32 %v2561_v18, %v2674_v9 }
 0x17f   :  { %v2696_v10 = vpop.f32.mrf.mxu0 }
 0x180   :  { %1194 = vmatmul.bf16.gmra.mxu2 %v2513_v36  ;;  %v2048_v36 = vld [vmem:[%s2876_s5 + $0x60] sm:$0xff]  ;;  %v990_v30 = vadd.f32 %v989_v12, %v941_v39  ;;  %v897_v12 = vadd.f32 %v2549_v51, %v2674_v9 }
 0x181   :  { %1243 = vmatmul.bf16.gmra.mxu3 %v2515_v38  ;;  %v943_v38 = vadd.f32 %v2557_v58, %v894_v4  ;;  %1506 = vmatpush.bf16.msrb.mxu1 %v2048_v36 }
 0x182   :  { %v2693_v28 = vpop.f32.mrf.mxu1  ;;  %v1039_v58 = vadd.f32 %v1038_v34, %v990_v30  ;;  %v946_v18 = vadd.f32 %v2567_v47, %v897_v12  ;;  %v904_v47 = vadd.f32 %v2584_v54, %v2674_v9 }
 0x183   :  { %v999_v63 = vpop.f32.mrf.mxu2  ;;  %v992_v0 = vadd.f32 %v991_v42, %v943_v38 }
 0x184   :  { %v2676_v37 = vpop.f32.mrf.mxu3  ;;  %v1274_v52 = vmax.f32 %v1039_v58, 0.0  ;;  %v995_v44 = vadd.f32 %v994_v3, %v946_v18  ;;  %v902_v3 = vadd.f32 %v2569_v31, %v2674_v9 }
 0x185   :  { %v1041_v23 = vadd.f32 %v1040_v43, %v992_v0 }
 0x186   :  { %v1044_v4 = vadd.f32 %v1043_v26, %v995_v44  ;;  %v953_v26 = vadd.f32 %v2606_v32, %v904_v47  ;;  %v951_v0 = vadd.f32 %v2589_v57, %v902_v3  ;;  %v909_v57 = vadd.f32 %v2608_v6, %v2674_v9 }
 0x187   :  { %v1276_v17 = vmax.f32 %v1041_v23, 0.0  ;;  %v2713_v43 = vpop.f32.mrf.mxu0 }
 0x188   :  { %v1000_v58 = vadd.f32 %v999_v63, %v951_v0  ;;  %v907_v63 = vadd.f32 %v2593_v1, %v2674_v9 }
 0x189   :  { %v1306_v42 = vpack.c.bf16 %v1276_v17, %v1274_v52 }
 0x18a   :  { %1121 = vmatmul.bf16.gmra.mxu0 %v2473_v21  ;;  %v2711_v34 = vpop.f32.mrf.mxu1  ;;  %v956_v6 = vadd.f32 %v2615_v27, %v907_v63  ;;  %v914_v27 = vadd.f32 %v2635_v41, %v2674_v9 }
 0x18b   :  { %1170 = vmatmul.bf16.gmra.mxu1 %v2475_v7  ;;  %v1001_v24 = vpop.f32.mrf.mxu2 }
 0x18c   :  { %v1050_v46 = vpop.f32.mrf.mxu3  ;;  %v1002_v30 = vadd.f32 %v1001_v24, %v953_v26 }
 0x18e   :  { %v1051_v31 = vadd.f32 %v1050_v46, %v1002_v30 }
 0x18f   :  { %v2724_v39 = vpop.f32.mrf.mxu0 }
 0x190   :  { %1199 = vmatmul.bf16.gmra.mxu2 %v2525_v61  ;;  %v2047_v61 = vld [vmem:[%s2876_s5 + $0x58] sm:$0xff]  ;;  %v1284_v52 = vmax.f32 %v1051_v31, 0.0 }
 0x191   :  { %1248 = vmatmul.bf16.gmra.mxu3 %v2527_v62  ;;  %v948_v62 = vadd.f32 %v2581_v53, %v899_v2  ;;  %1507 = vmatpush.bf16.msrb.mxu1 %v2047_v61  ;;  %v1049_v2 = vadd.f32 %v2676_v37, %v1000_v58  ;;  %v958_v37 = vadd.f32 %v2630_v35, %v909_v57 }
 0x192   :  { %v2720_v36 = vpop.f32.mrf.mxu1 }
 0x193   :  { %v2699_v21 = vpop.f32.mrf.mxu2  ;;  %v997_v14 = vadd.f32 %v996_v50, %v948_v62  ;;  %v1278_v50 = vmax.f32 %v1044_v4, 0.0  ;;  %v1282_v24 = vmax.f32 %v1049_v2, 0.0 }
 0x194   :  { %v2701_v7 = vpop.f32.mrf.mxu3  ;;  %v1005_v1 = vadd.f32 %v2699_v21, %v956_v6  ;;  %v912_v21 = vadd.f32 %v2620_v33, %v2674_v9 }
 0x195   :  { %v1046_v51 = vadd.f32 %v1045_v55, %v997_v14  ;;  %v1310_v46 = vpack.c.bf16 %v1284_v52, %v1282_v24  ;;  %v2797_v24 = vperm.slane %v2669_v60, 1 }
 0x196   :  { %v1054_v44 = vadd.f32 %v2701_v7, %v1005_v1  ;;  %v963_v7 = vadd.f32 %v2662_v29, %v914_v27 }
 0x197   :  { %v1280_v53 = vmax.f32 %v1046_v51, 0.0  ;;  %v2737_v17 = vpop.f32.mrf.mxu0 }
 0x19a   :  { %1462 = vmatmul.bf16.vlgmr.msrb.gmra.mxu0 %v1306_v42  ;;  %v2735_v54 = vpop.f32.mrf.mxu1 }
 0x19b   :  { %v1006_v5 = vpop.f32.mrf.mxu2 }
 0x19c   :  { %v1055_v11 = vpop.f32.mrf.mxu3  ;;  %v1007_v62 = vadd.f32 %v1006_v5, %v958_v37  ;;  %v1286_v5 = vmax.f32 %v1054_v44, 0.0 }
 0x19e   :  { %v1056_v14 = vadd.f32 %v1055_v11, %v1007_v62 }
 0x1a0   :  { %1204 = vmatmul.bf16.gmra.mxu2 %v2539_v15  ;;  %v1308_v15 = vpack.c.bf16 %v1280_v53, %v1278_v50  ;;  %v1288_v53 = vmax.f32 %v1056_v14, 0.0  ;;  %v961_v50 = vadd.f32 %v2647_v59, %v912_v21  ;;  %v919_v59 = vadd.f32 %v2664_v56, %v2674_v9 }
 0x1a1   :  { %1253 = vmatmul.bf16.gmra.mxu3 %v2543_v40  ;;  %v2046_v40 = vld [vmem:[%s2876_s5 + $0x50] sm:$0xff] }
 0x1a2   :  { %1508 = vmatpush.bf16.msrb.mxu1 %v2046_v40  ;;  %v2748_v42 = vpop.f32.mrf.mxu1 }
 0x1a3   :  { %v2718_v13 = vpop.f32.mrf.mxu2 }
 0x1a4   :  { %v2722_v38 = vpop.f32.mrf.mxu3  ;;  %v1010_v26 = vadd.f32 %v2718_v13, %v961_v50  ;;  %v917_v13 = vadd.f32 %v2652_v45, %v2674_v9  ;;  %v1088_v45 = vadd.f32 %v2737_v17, %v2797_v24 }
 0x1a6   :  { %v1059_v0 = vadd.f32 %v2722_v38, %v1010_v26 }
 0x1aa   :  { %1467 = vmatmul.bf16.gmra.mxu0 %v1308_v15  ;;  %v1136_v51 = vpop.f32.mrf.mxu1 }
 0x1ab   :  { %v1011_v55 = vpop.f32.mrf.mxu2 }
 0x1ac   :  { %v1060_v23 = vpop.f32.mrf.mxu3  ;;  %v1012_v15 = vadd.f32 %v1011_v55, %v963_v7  ;;  %v1290_v55 = vmax.f32 %v1059_v0, 0.0 }
 0x1ae   :  { %v1061_v33 = vadd.f32 %v1060_v23, %v1012_v15  ;;  %v966_v23 = vadd.f32 %v2680_v16, %v917_v13  ;;  %v924_v16 = vadd.f32 %v2696_v10, %v2674_v9 }
 0x1b0   :  { %1209 = vmatmul.bf16.gmra.mxu2 %v2559_v8  ;;  %v2045_v8 = vld [vmem:[%s2876_s5 + $0x48] sm:$0xff]  ;;  %v1292_v30 = vmax.f32 %v1061_v33, 0.0  ;;  %v973_v17 = vadd.f32 %v2720_v36, %v924_v16 }
 0x1b1   :  { %1258 = vmatmul.bf16.gmra.mxu3 %v2563_v19  ;;  %v2753_v19 = vpop.f32.mrf.mxu0  ;;  %1509 = vmatpush.bf16.msrb.mxu1 %v2045_v8 }
 0x1b2   :  { %v1138_v3 = vpop.f32.mrf.mxu1  ;;  %v1090_v60 = vadd.f32 %v2753_v19, %v2797_v24 }
 0x1b3   :  { %v1014_v32 = vpop.f32.mrf.mxu2 }
 0x1b4   :  { %v2742_v12 = vpop.f32.mrf.mxu3  ;;  %v1015_v56 = vadd.f32 %v1014_v32, %v966_v23  ;;  %v1139_v44 = vadd.f32 %v1138_v3, %v1090_v60 }
 0x1b9   :  { %v2761_v4 = vpop.f32.mrf.mxu0 }
 0x1ba   :  { %1472 = vmatmul.bf16.gmra.mxu0 %v1310_v46  ;;  %v1141_v31 = vpop.f32.mrf.mxu1  ;;  %v1093_v36 = vadd.f32 %v2761_v4, %v2797_v24  ;;  %v927_v4 = vadd.f32 %v2713_v43, %v2674_v9 }
 0x1bb   :  { %v1016_v61 = vpop.f32.mrf.mxu2 }
 0x1bc   :  { %v1065_v18 = vpop.f32.mrf.mxu3  ;;  %v976_v23 = vadd.f32 %v2735_v54, %v927_v4 }
 0x1c0   :  { %1214 = vmatmul.bf16.gmra.mxu2 %v2577_v48  ;;  %v1312_v48 = vpack.c.bf16 %v1288_v53, %v1286_v5 }
 0x1c1   :  { %1263 = vmatmul.bf16.gmra.mxu3 %v2579_v49  ;;  %v2044_v49 = vld [vmem:[%s2876_s5 + $0x40] sm:$0xff]  ;;  %v2776_v41 = vpop.f32.mrf.mxu0 }
 0x1c2   :  { %1510 = vmatpush.bf16.msrb.mxu1 %v2044_v49  ;;  %v1143_v63 = vpop.f32.mrf.mxu1 }
 0x1c3   :  { %v2763_v35 = vpop.f32.mrf.mxu2 }
 0x1c4   :  { %v2765_v47 = vpop.f32.mrf.mxu3 }
 0x1c9   :  { %v2788_v2 = vpop.f32.mrf.mxu0 }
 0x1ca   :  { %1477 = vmatmul.bf16.gmra.mxu0 %v1312_v48 }
 0x1cb   :  { %v1021_v11 = vpop.f32.mrf.mxu2 }
 0x1cc   :  { %v1070_v40 = vpop.f32.mrf.mxu3 }
 0x1d0   :  { %1219 = vmatmul.bf16.gmra.mxu2 %v2597_v20  ;;  %v1314_v20 = vpack.c.bf16 %v1292_v30, %v1290_v55  ;;  %v929_v30 = vadd.f32 %v2724_v39, %v2674_v9 }
 0x1d1   :  { %1268 = vmatmul.bf16.gmra.mxu3 %v2599_v22  ;;  %v968_v22 = vadd.f32 %v2693_v28, %v919_v59  ;;  %v2799_v8 = vpop.f32.mrf.mxu0  ;;  %v1064_v28 = vadd.f32 %v2742_v12, %v1015_v56  ;;  %v1146_v12 = vpop.f32.mrf.mxu1 }
 0x1d2   :  { %v978_v13 = vadd.f32 %v2748_v42, %v929_v30  ;;  %v1098_v42 = vadd.f32 %v2788_v2, %v2797_v24 }
 0x1d3   :  { %v2782_v29 = vpop.f32.mrf.mxu2  ;;  %v1017_v52 = vadd.f32 %v1016_v61, %v968_v22  ;;  %v1137_v61 = vadd.f32 %v1136_v51, %v1088_v45  ;;  %v1294_v32 = vmax.f32 %v1064_v28, 0.0  ;;  %v1022_v51 = vadd.f32 %v1021_v11, %v973_v17 }
 0x1d4   :  { %v2784_v58 = vpop.f32.mrf.mxu3  ;;  %v1147_v16 = vadd.f32 %v1146_v12, %v1098_v42 }
 0x1d5   :  { %v1066_v46 = vadd.f32 %v1065_v18, %v1017_v52  ;;  %v922_v18 = vadd.f32 %v2682_v25, %v2674_v9  ;;  %v1071_v25 = vadd.f32 %v1070_v40, %v1022_v51  ;;  %v1095_v40 = vadd.f32 %v2776_v41, %v2797_v24 }
 0x1d6   :  { %v1025_v41 = vadd.f32 %v2782_v29, %v976_v23  ;;  %v1100_v29 = vadd.f32 %v2799_v8, %v2797_v24 }
 0x1d7   :  { %v1296_v6 = vmax.f32 %v1066_v46, 0.0  ;;  %v971_v10 = vadd.f32 %v2711_v34, %v922_v18  ;;  %v1300_v0 = vmax.f32 %v1071_v25, 0.0 }
 0x1d9   :  { %v1316_v1 = vpack.c.bf16 %v1296_v6, %v1294_v32  ;;  %v2811_v53 = vpop.f32.mrf.mxu0  ;;  %v1020_v48 = vadd.f32 %v2763_v35, %v971_v10  ;;  %v1148_v33 = vpop.f32.mrf.mxu1  ;;  %v1142_v35 = vadd.f32 %v1141_v31, %v1093_v36 }
 0x1da   :  { %1482 = vmatmul.bf16.gmra.mxu0 %v1314_v20  ;;  %v1144_v20 = vadd.f32 %v1143_v63, %v1095_v40  ;;  %v1074_v63 = vadd.f32 %v2784_v58, %v1025_v41  ;;  %v1103_v12 = vadd.f32 %v2811_v53, %v2797_v24 }
 0x1db   :  { %v1026_v38 = vpop.f32.mrf.mxu2  ;;  %v1069_v3 = vadd.f32 %v2765_v47, %v1020_v48 }
 0x1dc   :  { %v2794_v57 = vpop.f32.mrf.mxu3  ;;  %v1027_v52 = vadd.f32 %v1026_v38, %v978_v13 }
 0x1dd   :  { %v1298_v59 = vmax.f32 %v1069_v3, 0.0 }
 0x1de   :  { %v1076_v9 = vadd.f32 %v2794_v57, %v1027_v52 }
 0x1df   :  { %v1318_v55 = vpack.c.bf16 %v1300_v0, %v1298_v59 }
 0x1e0   :  { %v1304_v38 = vmax.f32 %v1076_v9, 0.0 }
 0x1e1   :  { %v1104_v11 = vpop.f32.mrf.mxu0  ;;  %v1151_v46 = vpop.f32.mrf.mxu1 }
 0x1e2   :  { %v1152_v48 = vadd.f32 %v1151_v46, %v1103_v12 }
 0x1e3   :  { %v1185_v37 = vpop.f32.mrf.mxu2 }
 0x1e4   :  { %v1234_v62 = vpop.f32.mrf.mxu3  ;;  %v1186_v14 = vadd.f32 %v1185_v37, %v1137_v61  ;;  %v1302_v61 = vmax.f32 %v1074_v63, 0.0 }
 0x1e6   :  { %v1235_v5 = vadd.f32 %v1234_v62, %v1186_v14  ;;  %v1320_v32 = vpack.c.bf16 %v1304_v38, %v1302_v61 }
 0x1e8   :  { %v1275_v7 = vmax.f32 %v1235_v5, 0.0 }
 0x1e9   :  { %v1107_v28 = vpop.f32.mrf.mxu0  ;;  %v1153_v60 = vpop.f32.mrf.mxu1 }
 0x1ea   :  { %1487 = vmatmul.bf16.gmra.mxu0 %v1316_v1  ;;  %v1149_v1 = vadd.f32 %v1148_v33, %v1100_v29  ;;  %v1108_v30 = vadd.f32 %v1107_v28, %v2797_v24 }
 0x1eb   :  { %v1187_v27 = vpop.f32.mrf.mxu2 }
 0x1ec   :  { %v1188_v21 = vadd.f32 %v1187_v27, %v1139_v44  ;;  %v1236_v19 = vpop.f32.mrf.mxu3 }
 0x1ee   :  { %v1237_v49 = vadd.f32 %v1236_v19, %v1188_v21 }
 0x1f0   :  { %v1277_v50 = vmax.f32 %v1237_v49, 0.0  ;;  %v1105_v49 = vadd.f32 %v1104_v11, %v2797_v24 }
 0x1f1   :  { %v1109_v18 = vpop.f32.mrf.mxu0  ;;  %v1156_v51 = vpop.f32.mrf.mxu1 }
 0x1f2   :  { %v1307_v15 = vpack.c.bf16 %v1277_v50, %v1275_v7  ;;  %v1154_v7 = vadd.f32 %v1153_v60, %v1105_v49  ;;  %v1157_v4 = vadd.f32 %v1156_v51, %v1108_v30  ;;  %v1110_v11 = vadd.f32 %v1109_v18, %v2797_v24 }
 0x1f3   :  { %v1190_v26 = vpop.f32.mrf.mxu2 }
 0x1f4   :  { %v1239_v34 = vpop.f32.mrf.mxu3  ;;  %1511 = vmatmul.bf16.vlgmr.msrb.gmra.mxu1 %v1307_v15  ;;  %v1191_v47 = vadd.f32 %v1190_v26, %v1142_v35 }
 0x1f6   :  { %v1240_v56 = vadd.f32 %v1239_v34, %v1191_v47 }
 0x1f8   :  { %v1279_v43 = vmax.f32 %v1240_v56, 0.0 }
 0x1f9   :  { %v1112_v8 = vpop.f32.mrf.mxu0  ;;  %v1158_v36 = vpop.f32.mrf.mxu1 }
 0x1fa   :  { %1492 = vmatmul.bf16.gmra.mxu0 %v1318_v55  ;;  %v1113_v28 = vadd.f32 %v1112_v8, %v2797_v24 }
 0x1fb   :  { %v1192_v22 = vpop.f32.mrf.mxu2 }
 0x1fc   :  { %v1193_v39 = vadd.f32 %v1192_v22, %v1144_v20  ;;  %v1241_v31 = vpop.f32.mrf.mxu3  ;;  %v1159_v20 = vadd.f32 %v1158_v36, %v1110_v11 }
 0x1fe   :  { %v1242_v45 = vadd.f32 %v1241_v31, %v1193_v39 }
 0x200   :  { %v1281_v37 = vmax.f32 %v1242_v45, 0.0 }
 0x201   :  { %v1114_v33 = vpop.f32.mrf.mxu0  ;;  %v1161_v55 = vpop.f32.mrf.mxu1 }
 0x202   :  { %v1309_v6 = vpack.c.bf16 %v1281_v37, %v1279_v43  ;;  %v1162_v42 = vadd.f32 %v1161_v55, %v1113_v28  ;;  %v1115_v63 = vadd.f32 %v1114_v33, %v2797_v24 }
 0x203   :  { %v1195_v54 = vpop.f32.mrf.mxu2 }
 0x204   :  { %v1244_v62 = vpop.f32.mrf.mxu3  ;;  %1516 = vmatmul.bf16.gmra.mxu1 %v1309_v6  ;;  %v1196_v57 = vadd.f32 %v1195_v54, %v1147_v16 }
 0x206   :  { %v1245_v2 = vadd.f32 %v1244_v62, %v1196_v57 }
 0x208   :  { %v1283_v27 = vmax.f32 %v1245_v2, 0.0 }
 0x209   :  { %v1117_v47 = vpop.f32.mrf.mxu0  ;;  %v1163_v31 = vpop.f32.mrf.mxu1 }
 0x20a   :  { %1497 = vmatmul.bf16.gmra.mxu0 %v1320_v32  ;;  %v1164_v54 = vadd.f32 %v1163_v31, %v1115_v63 }
 0x20b   :  { %v1197_v14 = vpop.f32.mrf.mxu2 }
 0x20c   :  { %v1198_v17 = vadd.f32 %v1197_v14, %v1149_v1  ;;  %v1246_v58 = vpop.f32.mrf.mxu3  ;;  %v1118_v1 = vadd.f32 %v1117_v47, %v2797_v24 }
 0x20e   :  { %v1247_v44 = vadd.f32 %v1246_v58, %v1198_v17 }
 0x210   :  { %v1285_v10 = vmax.f32 %v1247_v44, 0.0 }
 0x211   :  { %v1119_v45 = vpop.f32.mrf.mxu0  ;;  %v1166_v38 = vpop.f32.mrf.mxu1 }
 0x212   :  { %v1311_v5 = vpack.c.bf16 %v1285_v10, %v1283_v27  ;;  %v1167_v27 = vadd.f32 %v1166_v38, %v1118_v1  ;;  %v1120_v10 = vadd.f32 %v1119_v45, %v2797_v24 }
 0x213   :  { %v1200_v21 = vpop.f32.mrf.mxu2 }
 0x214   :  { %v1249_v19 = vpop.f32.mrf.mxu3  ;;  %1521 = vmatmul.bf16.gmra.mxu1 %v1311_v5  ;;  %v1201_v25 = vadd.f32 %v1200_v21, %v1152_v48 }
 0x216   :  { %v1250_v3 = vadd.f32 %v1249_v19, %v1201_v25 }
 0x218   :  { %v1287_v34 = vmax.f32 %v1250_v3, 0.0 }
 0x219   :  { %v1122_v62 = vpop.f32.mrf.mxu0  ;;  %v1168_v58 = vpop.f32.mrf.mxu1 }
 0x21a   :  { %v1169_v51 = vadd.f32 %v1168_v58, %v1120_v10  ;;  %v1123_v36 = vadd.f32 %v1122_v62, %v2797_v24 }
 0x21b   :  { %v1202_v50 = vpop.f32.mrf.mxu2 }
 0x21c   :  { %v1203_v15 = vadd.f32 %v1202_v50, %v1154_v7  ;;  %v1251_v26 = vpop.f32.mrf.mxu3 }
 0x21e   :  { %v1252_v0 = vadd.f32 %v1251_v26, %v1203_v15 }
 0x220   :  { %v1289_v53 = vmax.f32 %v1252_v0, 0.0 }
 0x221   :  { %v1124_v44 = vpop.f32.mrf.mxu0  ;;  %v1171_v49 = vpop.f32.mrf.mxu1 }
 0x222   :  { %v1313_v35 = vpack.c.bf16 %v1289_v53, %v1287_v34  ;;  %v1172_v33 = vadd.f32 %v1171_v49, %v1123_v36  ;;  %v1125_v0 = vadd.f32 %v1124_v44, %v2797_v24 }
 0x223   :  { %v1205_v40 = vpop.f32.mrf.mxu2 }
 0x224   :  { %v1254_v59 = vpop.f32.mrf.mxu3  ;;  %1526 = vmatmul.bf16.gmra.mxu1 %v1313_v35  ;;  %v1206_v13 = vadd.f32 %v1205_v40, %v1157_v4 }
 0x226   :  { %v1255_v23 = vadd.f32 %v1254_v59, %v1206_v13 }
 0x228   :  { %v1291_v46 = vmax.f32 %v1255_v23, 0.0  ;;  %v2847_v23 = vld [vmem:[%s2877_s6] ss:$0 sm:$0xff]  ;;  %s2142_s6 = smov [#allocation7]  }
 0x229   :  { %v1463_v25 = vpop.f32.mrf.mxu0  ;;  %v1173_v53 = vpop.f32.mrf.mxu1  ;;  %s1572_s29 = sshll.u32 %s2142_s6, 4  ;;  %s1573_s29 = int_to_ptr.vmem [resolvable:$true] %s1572_s29 }
 0x22a   :  { %v1174_v35 = vadd.f32 %v1173_v53, %v1125_v0 }
 0x22b   :  { %v1207_v22 = vpop.f32.mrf.mxu2 }
 0x22c   :  { %v1208_v52 = vadd.f32 %v1207_v22, %v1159_v20  ;;  %v1256_v56 = vpop.f32.mrf.mxu3 }
 0x22e   :  { %v1257_v39 = vadd.f32 %v1256_v56, %v1208_v52  ;;  %v1464_v52 = vadd.f32 %v2847_v23, %v1463_v25 }
 0x230   :  { %v1293_v41 = vmax.f32 %v1257_v39, 0.0 }
 0x231   :  { %v1465_v30 = vpop.f32.mrf.mxu0 }
 0x232   :  { %v1315_v9 = vpack.c.bf16 %v1293_v41, %v1291_v46  ;;  %v1466_v46 = vadd.f32 %v2847_v23, %v1465_v30 }
 0x233   :  { %v1210_v43 = vpop.f32.mrf.mxu2 }
 0x234   :  { %v1259_v37 = vpop.f32.mrf.mxu3  ;;  %1531 = vmatmul.bf16.gmra.mxu1 %v1315_v9  ;;  %v1211_v6 = vadd.f32 %v1210_v43, %v1162_v42 }
 0x236   :  { %v1260_v29 = vadd.f32 %v1259_v37, %v1211_v6 }
 0x238   :  { %v1295_v57 = vmax.f32 %v1260_v29, 0.0 }
 0x239   :  { %v1468_v22 = vpop.f32.mrf.mxu0 }
 0x23a   :  { %v1469_v28 = vadd.f32 %v2847_v23, %v1468_v22 }
 0x23b   :  { %v1212_v16 = vpop.f32.mrf.mxu2 }
 0x23c   :  { %v1213_v61 = vadd.f32 %v1212_v16, %v1164_v54  ;;  %v1261_v60 = vpop.f32.mrf.mxu3 }
 0x23e   :  { %v1262_v32 = vadd.f32 %v1261_v60, %v1213_v61 }
 0x240   :  { %v1297_v18 = vmax.f32 %v1262_v32, 0.0 }
 0x241   :  { %v1470_v24 = vpop.f32.mrf.mxu0 }
 0x242   :  { %v1317_v14 = vpack.c.bf16 %v1297_v18, %v1295_v57  ;;  %v1471_v42 = vadd.f32 %v2847_v23, %v1470_v24 }
 0x243   :  { %v1215_v2 = vpop.f32.mrf.mxu2 }
 0x244   :  { %v1264_v17 = vpop.f32.mrf.mxu3  ;;  %1536 = vmatmul.bf16.gmra.mxu1 %v1317_v14  ;;  %v1216_v12 = vadd.f32 %v1215_v2, %v1167_v27 }
 0x246   :  { %v1265_v8 = vadd.f32 %v1264_v17, %v1216_v12 }
 0x248   :  { %v1299_v7 = vmax.f32 %v1265_v8, 0.0 }
 0x249   :  { %v1473_v31 = vpop.f32.mrf.mxu0 }
 0x24a   :  { %v1474_v38 = vadd.f32 %v2847_v23, %v1473_v31 }
 0x24b   :  { %v1217_v5 = vpop.f32.mrf.mxu2 }
 0x24c   :  { %v1218_v21 = vadd.f32 %v1217_v5, %v1169_v51  ;;  %v1266_v19 = vpop.f32.mrf.mxu3 }
 0x24e   :  { %v1267_v48 = vadd.f32 %v1266_v19, %v1218_v21 }
 0x250   :  { %v1301_v50 = vmax.f32 %v1267_v48, 0.0 }
 0x251   :  { %v1475_v9 = vpop.f32.mrf.mxu0 }
 0x252   :  { %v1319_v3 = vpack.c.bf16 %v1301_v50, %v1299_v7  ;;  %v1476_v61 = vadd.f32 %v2847_v23, %v1475_v9 }
 0x253   :  { %v1220_v15 = vpop.f32.mrf.mxu2 }
 0x254   :  { %v1269_v26 = vpop.f32.mrf.mxu3  ;;  %1541 = vmatmul.bf16.gmra.mxu1 %v1319_v3  ;;  %v1221_v34 = vadd.f32 %v1220_v15, %v1172_v33 }
 0x256   :  { %v1270_v59 = vadd.f32 %v1269_v26, %v1221_v34 }
 0x258   :  { %v1303_v47 = vmax.f32 %v1270_v59, 0.0 }
 0x259   :  { %v1478_v54 = vpop.f32.mrf.mxu0 }
 0x25a   :  { %v1479_v18 = vadd.f32 %v2847_v23, %v1478_v54 }
 0x25b   :  { %v1222_v40 = vpop.f32.mrf.mxu2 }
 0x25c   :  { %v1223_v4 = vadd.f32 %v1222_v40, %v1174_v35  ;;  %v1271_v11 = vpop.f32.mrf.mxu3 }
 0x25e   :  { %v1272_v55 = vadd.f32 %v1271_v11, %v1223_v4 }
 0x260   :  { %v1305_v13 = vmax.f32 %v1272_v55, 0.0 }
 0x261   :  { %v1480_v29 = vpop.f32.mrf.mxu0 }
 0x262   :  { %v1321_v20 = vpack.c.bf16 %v1305_v13, %v1303_v47  ;;  %v1481_v2 = vadd.f32 %v2847_v23, %v1480_v29 }
 0x264   :  { %1546 = vmatmul.bf16.gmra.mxu1 %v1321_v20 }
 0x269   :  { %v1483_v57 = vpop.f32.mrf.mxu0 }
 0x26a   :  { %v1484_v27 = vadd.f32 %v2847_v23, %v1483_v57 }
 0x271   :  { %v1512_v56 = vpop.f32.mrf.mxu1  ;;  %v1485_v17 = vpop.f32.mrf.mxu0 }
 0x272   :  { %v1513_v39 = vadd.f32 %v1512_v56, %v1464_v52  ;;  %v1486_v5 = vadd.f32 %v2847_v23, %v1485_v17 }
 0x274   :  { %1552 = vst [vmem:[#allocation7] sm:$0xff] %v1513_v39 }
 0x279   :  { %v1514_v41 = vpop.f32.mrf.mxu1  ;;  %v1488_v51 = vpop.f32.mrf.mxu0 }
 0x27a   :  { %v1515_v45 = vadd.f32 %v1514_v41, %v1466_v46  ;;  %v1489_v48 = vadd.f32 %v2847_v23, %v1488_v51 }
 0x27c   :  { %1553 = vst [vmem:[#allocation7 + $0x8] sm:$0xff] %v1515_v45 }
 0x281   :  { %v1517_v43 = vpop.f32.mrf.mxu1  ;;  %v1490_v19 = vpop.f32.mrf.mxu0 }
 0x282   :  { %v1518_v37 = vadd.f32 %v1517_v43, %v1469_v28  ;;  %v1491_v50 = vadd.f32 %v2847_v23, %v1490_v19 }
 0x284   :  { %1554 = vst [vmem:[#allocation7 + $0x10] sm:$0xff] %v1518_v37 }
 0x289   :  { %v1519_v63 = vpop.f32.mrf.mxu1  ;;  %v1493_v7 = vpop.f32.mrf.mxu0 }
 0x28a   :  { %v1520_v6 = vadd.f32 %v1519_v63, %v1471_v42  ;;  %v1494_v15 = vadd.f32 %v2847_v23, %v1493_v7 }
 0x28c   :  { %1555 = vst [vmem:[#allocation7 + $0x18] sm:$0xff] %v1520_v6 }
 0x291   :  { %v1522_v62 = vpop.f32.mrf.mxu1  ;;  %v1495_v26 = vpop.f32.mrf.mxu0 }
 0x292   :  { %v1523_v16 = vadd.f32 %v1522_v62, %v1474_v38  ;;  %v1496_v34 = vadd.f32 %v2847_v23, %v1495_v26 }
 0x294   :  { %1556 = vst [vmem:[#allocation7 + $0x20] sm:$0xff] %v1523_v16 }
 0x299   :  { %v1524_v60 = vpop.f32.mrf.mxu1  ;;  %v1498_v35 = vpop.f32.mrf.mxu0 }
 0x29a   :  { %v1525_v32 = vadd.f32 %v1524_v60, %v1476_v61  ;;  %v1499_v40 = vadd.f32 %v2847_v23, %v1498_v35 }
 0x29c   :  { %1557 = vst [vmem:[#allocation7 + $0x28] sm:$0xff] %v1525_v32 }
 0x2a1   :  { %v1527_v1 = vpop.f32.mrf.mxu1  ;;  %v1500_v11 = vpop.f32.mrf.mxu0 }
 0x2a2   :  { %v1528_v14 = vadd.f32 %v1527_v1, %v1479_v18  ;;  %v1501_v55 = vadd.f32 %v2847_v23, %v1500_v11 }
 0x2a4   :  { %1558 = vst [vmem:[#allocation7 + $0x30] sm:$0xff] %v1528_v14 }
 0x2a9   :  { %v1529_v58 = vpop.f32.mrf.mxu1 }
 0x2aa   :  { %v1530_v44 = vadd.f32 %v1529_v58, %v1481_v2 }
 0x2ac   :  { %1559 = vst [vmem:[#allocation7 + $0x38] sm:$0xff] %v1530_v44 }
 0x2b1   :  { %v1532_v10 = vpop.f32.mrf.mxu1 }
 0x2b2   :  { %v1533_v12 = vadd.f32 %v1532_v10, %v1484_v27 }
 0x2b4   :  { %1560 = vst [vmem:[#allocation7 + $0x40] sm:$0xff] %v1533_v12 }
 0x2b9   :  { %v1534_v8 = vpop.f32.mrf.mxu1 }
 0x2ba   :  { %v1535_v21 = vadd.f32 %v1534_v8, %v1486_v5 }
 0x2bc   :  { %1561 = vst [vmem:[#allocation7 + $0x48] sm:$0xff] %v1535_v21 }
 0x2c1   :  { %v1537_v49 = vpop.f32.mrf.mxu1 }
 0x2c2   :  { %v1538_v25 = vadd.f32 %v1537_v49, %v1489_v48 }
 0x2c4   :  { %1562 = vst [vmem:[#allocation7 + $0x50] sm:$0xff] %v1538_v25 }
 0x2c9   :  { %v1539_v36 = vpop.f32.mrf.mxu1 }
 0x2ca   :  { %v1540_v3 = vadd.f32 %v1539_v36, %v1491_v50 }
 0x2cc   :  { %1563 = vst [vmem:[#allocation7 + $0x58] sm:$0xff] %v1540_v3 }
 0x2d1   :  { %v1542_v33 = vpop.f32.mrf.mxu1 }
 0x2d2   :  { %v1543_v0 = vadd.f32 %v1542_v33, %v1494_v15 }
 0x2d4   :  { %1564 = vst [vmem:[#allocation7 + $0x60] sm:$0xff] %v1543_v0 }
 0x2d9   :  { %v1544_v53 = vpop.f32.mrf.mxu1 }
 0x2da   :  { %v1545_v30 = vadd.f32 %v1544_v53, %v1496_v34 }
 0x2dc   :  { %1565 = vst [vmem:[#allocation7 + $0x68] sm:$0xff] %v1545_v30 }
 0x2e1   :  { %v1547_v59 = vpop.f32.mrf.mxu1 }
 0x2e2   :  { %v1548_v4 = vadd.f32 %v1547_v59, %v1499_v40 }
 0x2e4   :  { %1566 = vst [vmem:[#allocation7 + $0x70] sm:$0xff] %v1548_v4 }
 0x2e9   :  { %v1549_v47 = vpop.f32.mrf.mxu1 }
 0x2ea   :  { %v1550_v13 = vadd.f32 %v1549_v47, %v1501_v55 }
 0x2ec   :  { %1567 = vst [vmem:[#allocation7 + $0x78] sm:$0xff] %v1550_v13 }
 0x2ed   :  { %1580 = dma.vmem_to_hbm [thread:$0]  %s1573_s29, 2048, %s1575_s9, [#allocation4], %s2140_s11, %s2140_s11, %s2141_s12  }
 0x2ee   :  { %2136 = dma.done.wait [#allocation4], 2048  }
 0x2ef   :  { %2137 = vsyncadd [#allocation4], 4294965248 }
 0x2f0   :  { %1585 = vsyncpa [#allocation3], 1 }
 0x2f1   :  { %1586 = vsyncpa [#allocation6], 1 }
 0x2f2   :  { %1587 = vsyncpa [#allocation4], 1 }

</bundles_post_ra>
